<compile_context>
chip_gen: v7x
topology: tpu7x:2x2x1
jax: 0.10.0
libtpu: 0.0.40
codegen_flags: <defaults>
</compile_context>

<pallas_src>
import jax
import jax.numpy as jnp
from jax.experimental import pallas as pl
from jax.experimental.pallas import tpu as pltpu


def mlp_kernel(x_ref, w1_ref, b1_ref, w2_ref, b2_ref, o_ref):
    # Hidden layer: (TB, K) @ (K, H) on the MXU in bf16, f32 accumulate; bias + ReLU on the VPU.
    h = jnp.dot(x_ref[...], w1_ref[...], preferred_element_type=jnp.float32)
    h = jnp.maximum(h + b1_ref[...], 0.0)
    # Output layer: (TB, H) @ (H, N) in bf16, f32 accumulate; bias add; store f32.
    out = jnp.dot(h.astype(w2_ref.dtype), w2_ref[...], preferred_element_type=jnp.float32)
    o_ref[...] = (out + b2_ref[...]).astype(o_ref.dtype)


def _round_up(v, m):
    return (v + m - 1) // m * m


def mlp_forward(x, w1, b1, w2, b2, *, block_b=256):
    """Pallas MLP forward.

    x:  (B, K) float
    w1: (K, H), b1: (1, H), w2: (H, N), b2: (1, N)
    Returns (B, N) float32.
    """
    B, K = x.shape
    H = w1.shape[1]
    N = w2.shape[1]

    # Lane-align feature dims (multiples of 128) -> unmasked vector loads/stores, clean MXU passes.
    K_pad = _round_up(K, 128)
    H_pad = _round_up(H, 128)
    N_pad = _round_up(N, 128)

    # Batch tile: multiple of 8 sublanes, capped at block_b.
    TB = min(_round_up(B, 8), block_b)
    B_pad = _round_up(B, TB)

    # Pad + cast. MXU operands -> bf16; biases stay f32 (added after f32 accumulation).
    x_p = jnp.zeros((B_pad, K_pad), jnp.bfloat16).at[:B, :K].set(x.astype(jnp.bfloat16))
    w1_p = jnp.zeros((K_pad, H_pad), jnp.bfloat16).at[:K, :H].set(w1.astype(jnp.bfloat16))
    b1_p = jnp.zeros((1, H_pad), jnp.float32).at[:, :H].set(b1.astype(jnp.float32))
    w2_p = jnp.zeros((H_pad, N_pad), jnp.bfloat16).at[:H, :N].set(w2.astype(jnp.bfloat16))
    b2_p = jnp.zeros((1, N_pad), jnp.float32).at[:, :N].set(b2.astype(jnp.float32))

    grid = (B_pad // TB,)

    out = pl.pallas_call(
        mlp_kernel,
        out_shape=jax.ShapeDtypeStruct((B_pad, N_pad), jnp.float32),
        grid_spec=pltpu.PrefetchScalarGridSpec(
            num_scalar_prefetch=0,
            grid=grid,
            in_specs=[
                # Activations: tiled over the batch grid (double-buffered by Pallas).
                pl.BlockSpec((TB, K_pad), lambda i: (i, 0)),
                # Weights / biases: constant block index -> fetched once, VMEM-resident.
                pl.BlockSpec((K_pad, H_pad), lambda i: (0, 0)),
                pl.BlockSpec((1, H_pad), lambda i: (0, 0)),
                pl.BlockSpec((H_pad, N_pad), lambda i: (0, 0)),
                pl.BlockSpec((1, N_pad), lambda i: (0, 0)),
            ],
            out_specs=pl.BlockSpec((TB, N_pad), lambda i: (i, 0)),
        ),
        compiler_params=pltpu.CompilerParams(
            dimension_semantics=("parallel",),  # shard batch tiles across TCs on v7x
        ),
    )(x_p, w1_p, b1_p, w2_p, b2_p)

    # Strip batch / lane padding.
    return out[:B, :N]


def init_params(key, input_size=300, hidden_size=512, output_size=874):
    """Deterministic parameter init (PyTorch-style uniform(-1/sqrt(fan_in), 1/sqrt(fan_in)))."""
    k1, k2, k3, k4 = jax.random.split(key, 4)
    bound1 = 1.0 / jnp.sqrt(input_size)
    bound2 = 1.0 / jnp.sqrt(hidden_size)
    w1 = jax.random.uniform(k1, (input_size, hidden_size), jnp.float32, -bound1, bound1)
    b1 = jax.random.uniform(k2, (1, hidden_size), jnp.float32, -bound1, bound1)
    w2 = jax.random.uniform(k3, (hidden_size, output_size), jnp.float32, -bound2, bound2)
    b2 = jax.random.uniform(k4, (1, output_size), jnp.float32, -bound2, bound2)
    return w1, b1, w2, b2


if __name__ == "__main__":
    key = jax.random.PRNGKey(0)
    k_x, k_p = jax.random.split(key)

    batch = 8
    input_size = 300
    output_size = 874

    x = jax.random.normal(k_x, (batch, input_size), dtype=jnp.float32)
    w1, b1, w2, b2 = init_params(k_p, input_size=input_size, output_size=output_size)

    out = mlp_forward(x, w1, b1, w2, b2)
    out = jax.block_until_ready(out)

    # Pure-JAX f32 reference of the same math (bf16 MXU inputs -> loosened tolerance).
    ref = jnp.maximum(x @ w1 + b1, 0.0) @ w2 + b2
    assert out.shape == (batch, output_size)
    assert jnp.allclose(out, ref, atol=3e-2, rtol=3e-2), float(jnp.max(jnp.abs(out - ref)))

    print("KERNEL_OK")
</pallas_src>

<mosaic_0001>
module attributes {stable_mosaic.version = 11 : i64} {
  func.func @mlp_kernel(%arg0: i32, %arg1: memref<8x384xbf16, #tpu.memory_space<vmem>>, %arg2: memref<384x512xbf16, #tpu.memory_space<vmem>>, %arg3: memref<1x512xf32, #tpu.memory_space<vmem>>, %arg4: memref<512x896xbf16, #tpu.memory_space<vmem>>, %arg5: memref<1x896xf32, #tpu.memory_space<vmem>>, %arg6: memref<8x896xf32, #tpu.memory_space<vmem>>) attributes {dimension_semantics = [#tpu.dimension_semantics<parallel>], iteration_bounds = array<i64: 1>, scalar_prefetch = 0 : i64, scratch_operands = 0 : i64, tpu.core_type = #tpu.core_type<tc>, window_params = [{transform_indices = @transform_0, window_bounds = array<i64: 8, 384>}, {pipeline_mode = #tpu.pipeline_mode<synchronous>, transform_indices = @transform_1, window_bounds = array<i64: 384, 512>}, {pipeline_mode = #tpu.pipeline_mode<synchronous>, transform_indices = @transform_2, window_bounds = array<i64: 1, 512>}, {pipeline_mode = #tpu.pipeline_mode<synchronous>, transform_indices = @transform_3, window_bounds = array<i64: 512, 896>}, {pipeline_mode = #tpu.pipeline_mode<synchronous>, transform_indices = @transform_4, window_bounds = array<i64: 1, 896>}, {transform_indices = @transform_5, window_bounds = array<i64: 8, 896>}]} {
    %c0 = arith.constant 0 : index
    %c0_0 = arith.constant 0 : index
    %0 = vector.load %arg1[%c0, %c0_0] : memref<8x384xbf16, #tpu.memory_space<vmem>>, vector<8x384xbf16>
    %c0_1 = arith.constant 0 : index
    %c0_2 = arith.constant 0 : index
    %1 = vector.load %arg2[%c0_1, %c0_2] : memref<384x512xbf16, #tpu.memory_space<vmem>>, vector<384x512xbf16>
    %cst = arith.constant dense<0.000000e+00> : vector<8x512xf32>
    %2 = tpu.matmul %0, %1, %cst {dimension_numbers = #tpu.dot_dimension_numbers<[1], [0], [0], [1], [0, 0, 1, 1], [], []>} : vector<8x384xbf16>, vector<384x512xbf16>, vector<8x512xf32> -> vector<8x512xf32>
    %c0_3 = arith.constant 0 : index
    %c0_4 = arith.constant 0 : index
    %3 = vector.load %arg3[%c0_3, %c0_4] : memref<1x512xf32, #tpu.memory_space<vmem>>, vector<1x512xf32>
    %4 = vector.broadcast %3 : vector<1x512xf32> to vector<8x512xf32>
    %5 = arith.addf %2, %4 : vector<8x512xf32>
    %cst_5 = arith.constant 0.000000e+00 : f32
    %6 = vector.broadcast %cst_5 : f32 to vector<8x512xf32>
    %7 = arith.maximumf %5, %6 : vector<8x512xf32>
    %8 = arith.truncf %7 : vector<8x512xf32> to vector<8x512xbf16>
    %c0_6 = arith.constant 0 : index
    %c0_7 = arith.constant 0 : index
    %9 = vector.load %arg4[%c0_6, %c0_7] : memref<512x896xbf16, #tpu.memory_space<vmem>>, vector<512x896xbf16>
    %cst_8 = arith.constant dense<0.000000e+00> : vector<8x896xf32>
    %10 = tpu.matmul %8, %9, %cst_8 {dimension_numbers = #tpu.dot_dimension_numbers<[1], [0], [0], [1], [0, 0, 1, 1], [], []>} : vector<8x512xbf16>, vector<512x896xbf16>, vector<8x896xf32> -> vector<8x896xf32>
    %c0_9 = arith.constant 0 : index
    %c0_10 = arith.constant 0 : index
    %11 = vector.load %arg5[%c0_9, %c0_10] : memref<1x896xf32, #tpu.memory_space<vmem>>, vector<1x896xf32>
    %12 = vector.broadcast %11 : vector<1x896xf32> to vector<8x896xf32>
    %13 = arith.addf %10, %12 : vector<8x896xf32>
    %c0_11 = arith.constant 0 : index
    %c0_12 = arith.constant 0 : index
    %14 = vector.load %arg6[%c0_11, %c0_12] : memref<8x896xf32, #tpu.memory_space<vmem>>, vector<8x896xf32>
    tpu.vector_store %arg6[%c0_11, %c0_12], %13 {strides = array<i32>} : memref<8x896xf32, #tpu.memory_space<vmem>>, vector<8x896xf32>,
    return
  }
  func.func @transform_0(%arg0: i32) -> (i32, i32) {
    %c0_i32 = arith.constant 0 : i32
    %c0_i32_0 = arith.constant 0 : i32
    return %arg0, %c0_i32 : i32, i32
  }
  func.func @transform_1(%arg0: i32) -> (i32, i32) {
    %c0_i32 = arith.constant 0 : i32
    %c0_i32_0 = arith.constant 0 : i32
    %c0_i32_1 = arith.constant 0 : i32
    return %c0_i32, %c0_i32_0 : i32, i32
  }
  func.func @transform_2(%arg0: i32) -> (i32, i32) {
    %c0_i32 = arith.constant 0 : i32
    %c0_i32_0 = arith.constant 0 : i32
    %c0_i32_1 = arith.constant 0 : i32
    return %c0_i32, %c0_i32_0 : i32, i32
  }
  func.func @transform_3(%arg0: i32) -> (i32, i32) {
    %c0_i32 = arith.constant 0 : i32
    %c0_i32_0 = arith.constant 0 : i32
    %c0_i32_1 = arith.constant 0 : i32
    return %c0_i32, %c0_i32_0 : i32, i32
  }
  func.func @transform_4(%arg0: i32) -> (i32, i32) {
    %c0_i32 = arith.constant 0 : i32
    %c0_i32_0 = arith.constant 0 : i32
    %c0_i32_1 = arith.constant 0 : i32
    return %c0_i32, %c0_i32_0 : i32, i32
  }
  func.func @transform_5(%arg0: i32) -> (i32, i32) {
    %c0_i32 = arith.constant 0 : i32
    %c0_i32_0 = arith.constant 0 : i32
    return %arg0, %c0_i32 : i32, i32
  }
}

</mosaic_0001>

<bundles_post_ra>
// kernel: tpu_custom_call.1
= control target key start
LH: loop header
LB: loop body
LE: loop exit
PB: predicated region body
PF: predicated region fallthrough
CT: control target
= control target key end

     0   :  { %10 = vsyncpa [#allocation3], 0  ;;  %s3761_s0 = inlined_call_operand.hbm [shape: bf16[8,384], index: 0, kind: input, shape index: {}]   ;;  %s3762_s1 = inlined_call_operand.hbm [shape: bf16[384,512], index: 1, kind: input, shape index: {}]   ;;  %s3763_s2 = inlined_call_operand.vmem [shape: f32[1,512], index: 2, kind: input, shape index: {}]   ;;  %s3764_s3 = inlined_call_operand.hbm [shape: bf16[512,896], index: 3, kind: input, shape index: {}]   ;;  %s3765_s4 = inlined_call_operand.vmem [shape: f32[1,896], index: 4, kind: input, shape index: {}]   ;;  %s3766_s5 = inlined_call_operand.hbm [shape: f32[8,896], index: 5, kind: output, shape index: {}]  }
   0x1   :  { %11 = vsyncpa [#allocation6], 0 }
   0x2   :  { %12 = vsyncpa [#allocation4], 0  ;;  %s3603_s18 = smov [#allocation5]   ;;  %s3509_s22 = scalar_lea.hbm %s3762_s1, 12288 }
   0x3   :  { %s28_s19 = sshll.u32 %s3603_s18, 4  ;;  %p3510_p0 = scmp.ne.s32.totalorder %s3762_s1, %s3509_s22  ;;  %s29_s19 = int_to_ptr.vmem [resolvable:$true] %s28_s19 }
   0x4   :  { %p3513_p1 = scmp.lt.u32.totalorder %s3509_s22, %s3762_s1 }
   0x6   :  { %p3515_p2 = pnand %p3513_p1, %p3510_p0 }
   0x8   :  { %3518 = shalt.err (!%p3515_p2)
}
   0x9   :  { %s3519_s27 = scalar_lea.vmem %s29_s19, 12288  ;;  %p3524_p4 = scmp.lt.s32.totalorder %s29_s19, %s29_s19 }
   0xa   :  { %p3520_p3 = scmp.ne.s32.totalorder %s29_s19, %s3519_s27  ;;  %p3525_p5 = scmp.lt.s32.totalorder %s3519_s27, %s3519_s27 }
   0xc   :  { %p3526_p6 = por %p3525_p5, %p3524_p4 }
   0xe   :  { %p3527_p7 = pnand %p3526_p6, %p3520_p3 }
  0x10   :  { %3530 = shalt.err (!%p3527_p7)
}
  0x11   :  { %s3604_s28 = smov 256   ;;  %s3605_s29 = smov 16  }
  0x12   :  { %34 = dma.hbm_to_vmem [thread:$0]  %s3762_s1, 12288, %s29_s19, [#allocation6], %s3604_s28, %s3604_s28, %s3605_s29  }
  0x13   :  { %s3606_s7 = smov [#allocation2]   ;;  %s3607_s9 = smov [#allocation7]  }
  0x14   :  { %s19_s8 = sshll.u32 %s3606_s7, 4  ;;  %s42_s10 = sshll.u32 %s3607_s9, 4  ;;  %s20_s8 = int_to_ptr.vmem [resolvable:$true] %s19_s8  ;;  %s43_s10 = int_to_ptr.vmem [resolvable:$true] %s42_s10 }
  0x15   :  { %s3531_s13 = scalar_lea.hbm %s3761_s0, 192 }
  0x16   :  { %p3532_p8 = scmp.ne.s32.totalorder %s3761_s0, %s3531_s13  ;;  %p3535_p9 = scmp.lt.u32.totalorder %s3531_s13, %s3761_s0 }
  0x18   :  { %p3537_p10 = pnand %p3535_p9, %p3532_p8 }
  0x1a   :  { %3540 = shalt.err (!%p3537_p10)
}
  0x1b   :  { %s3541_s1 = scalar_lea.vmem %s20_s8, 192  ;;  %p3546_p12 = scmp.lt.s32.totalorder %s20_s8, %s20_s8 }
  0x1c   :  { %p3542_p11 = scmp.ne.s32.totalorder %s20_s8, %s3541_s1  ;;  %p3547_p13 = scmp.lt.s32.totalorder %s3541_s1, %s3541_s1 }
  0x1e   :  { %p3548_p0 = por %p3547_p13, %p3546_p12 }
  0x20   :  { %p3549_p1 = pnand %p3548_p0, %p3542_p11 }
  0x22   :  { %3552 = shalt.err (!%p3549_p1)
}
  0x23   :  { %22 = dma.hbm_to_vmem [thread:$0]  %s3761_s0, 192, %s20_s8, [#allocation3]  }
  0x24   :  { %s3553_s22 = scalar_lea.hbm %s3764_s3, 28672 }
  0x25   :  { %p3554_p2 = scmp.ne.s32.totalorder %s3764_s3, %s3553_s22  ;;  %p3557_p3 = scmp.lt.u32.totalorder %s3553_s22, %s3764_s3 }
  0x27   :  { %p3559_p4 = pnand %p3557_p3, %p3554_p2 }
  0x29   :  { %3562 = shalt.err (!%p3559_p4)
}
  0x2a   :  { %s3563_s27 = scalar_lea.vmem %s43_s10, 28672  ;;  %p3568_p6 = scmp.lt.s32.totalorder %s43_s10, %s43_s10 }
  0x2b   :  { %p3564_p5 = scmp.ne.s32.totalorder %s43_s10, %s3563_s27  ;;  %p3569_p7 = scmp.lt.s32.totalorder %s3563_s27, %s3563_s27 }
  0x2d   :  { %p3570_p8 = por %p3569_p7, %p3568_p6 }
  0x2f   :  { %p3571_p9 = pnand %p3570_p8, %p3564_p5 }
  0x31   :  { %3574 = shalt.err (!%p3571_p9)
}
  0x32   :  { %s3608_s0 = smov 448   ;;  %s3609_s28 = smov 28  }
  0x33   :  { %48 = dma.hbm_to_vmem [thread:$0]  %s3764_s3, 28672, %s43_s10, [#allocation6], %s3608_s0, %s3608_s0, %s3609_s28  }
  0x34   :  { %3597 = dma.done.wait [#allocation3], 192  }
  0x35   :  { %3598 = vsyncadd [#allocation3], 4294967104 }
  0x36   :  { %3599 = dma.done.wait [#allocation6], 40960  }
  0x37   :  { %3600 = vsyncadd [#allocation6], 4294926336  ;;  %v3610_v0 = vmov 0   ;;  %v3042_v1 = vld [vmem:[#allocation5 + $0x4] ss:$16 sps:$4 sm:$0xff]  }
  0x38   :  { %745 = vmatprep.mubr.bf16.mxu1 %v3610_v0  ;;  %v3044_v2 = vld [vmem:[#allocation5 + $0x204] ss:$16 sps:$4 sm:$0xff]   ;;  %672 = vmatprep.subr.bf16.mxu0 %v3042_v1  ;;  %v3046_v3 = vld [vmem:[#allocation5] ss:$16 sps:$4 sm:$0xff]   ;;  %v3095_v34 = vld [vmem:[#allocation5 + $0xc] ss:$16 sps:$4 sm:$0xff]  }
  0x39   :  { %v3047_v4 = vld [vmem:[#allocation5 + $0x200] ss:$16 sps:$4 sm:$0xff]   ;;  %713 = vmatprep.subr.bf16.mxu1 %v3044_v2  ;;  %v3048_v5 = vld [vmem:[#allocation5 + $0x24] ss:$16 sps:$4 sm:$0xff]   ;;  %673 = vmatpush1.bf16.msra.mxu0 %v3046_v3  ;;  %v3679_v35 = vld [vmem:[#allocation2 + $0x8] ss:$0 sps:$4 sm:$0xff]  }
  0x3a   :  { %714 = vmatpush1.bf16.msra.mxu1 %v3047_v4  ;;  %v3050_v6 = vld [vmem:[#allocation5 + $0x224] ss:$16 sps:$4 sm:$0xff]   ;;  %v3052_v7 = vld [vmem:[#allocation5 + $0x20] ss:$16 sps:$4 sm:$0xff]   ;;  %674 = vmatprep.subr.bf16.mxu0 %v3048_v5  ;;  %v3093_v36 = vld [vmem:[#allocation5 + $0x8] ss:$16 sps:$4 sm:$0xff]  }
  0x3b   :  { %v3053_v8 = vld [vmem:[#allocation5 + $0x220] ss:$16 sps:$4 sm:$0xff]   ;;  %715 = vmatprep.subr.bf16.mxu1 %v3050_v6  ;;  %v3054_v9 = vld [vmem:[#allocation5 + $0x44] ss:$16 sps:$4 sm:$0xff]   ;;  %v3101_v39 = vld [vmem:[#allocation5 + $0x2c] ss:$16 sps:$4 sm:$0xff]  }
  0x3c   :  { %v3056_v10 = vld [vmem:[#allocation5 + $0x244] ss:$16 sps:$4 sm:$0xff]   ;;  %v3058_v11 = vld [vmem:[#allocation5 + $0x40] ss:$16 sps:$4 sm:$0xff]   ;;  %v3099_v40 = vld [vmem:[#allocation5 + $0x28] ss:$16 sps:$4 sm:$0xff]  }
  0x3d   :  { %v3059_v12 = vld [vmem:[#allocation5 + $0x240] ss:$16 sps:$4 sm:$0xff]   ;;  %675 = vmatpush1.bf16.msra.mxu0 %v3052_v7  ;;  %v3060_v13 = vld [vmem:[#allocation5 + $0x64] ss:$16 sps:$4 sm:$0xff]   ;;  %v3107_v43 = vld [vmem:[#allocation5 + $0x4c] ss:$16 sps:$4 sm:$0xff]  }
  0x3e   :  { %716 = vmatpush1.bf16.msra.mxu1 %v3053_v8  ;;  %676 = vmatprep.subr.bf16.mxu0 %v3054_v9  ;;  %v3062_v14 = vld [vmem:[#allocation5 + $0x264] ss:$16 sps:$4 sm:$0xff]   ;;  %v3064_v15 = vld [vmem:[#allocation5 + $0x60] ss:$16 sps:$4 sm:$0xff]   ;;  %v3105_v44 = vld [vmem:[#allocation5 + $0x48] ss:$16 sps:$4 sm:$0xff]  }
  0x3f   :  { %717 = vmatprep.subr.bf16.mxu1 %v3056_v10  ;;  %v3065_v16 = vld [vmem:[#allocation5 + $0x260] ss:$16 sps:$4 sm:$0xff]   ;;  %v3066_v17 = vld [vmem:[#allocation5 + $0x84] ss:$16 sps:$4 sm:$0xff]   ;;  %v3113_v47 = vld [vmem:[#allocation5 + $0x6c] ss:$16 sps:$4 sm:$0xff]  }
  0x40   :  { %v3068_v18 = vld [vmem:[#allocation5 + $0x284] ss:$16 sps:$4 sm:$0xff]   ;;  %v3070_v19 = vld [vmem:[#allocation5 + $0x80] ss:$16 sps:$4 sm:$0xff]   ;;  %v3111_v48 = vld [vmem:[#allocation5 + $0x68] ss:$16 sps:$4 sm:$0xff]  }
  0x41   :  { %677 = vmatpush1.bf16.msra.mxu0 %v3058_v11  ;;  %v3071_v20 = vld [vmem:[#allocation5 + $0x280] ss:$16 sps:$4 sm:$0xff]   ;;  %v3072_v21 = vld [vmem:[#allocation5 + $0xa4] ss:$16 sps:$4 sm:$0xff]   ;;  %v3119_v53 = vld [vmem:[#allocation5 + $0x8c] ss:$16 sps:$4 sm:$0xff]  }
  0x42   :  { %718 = vmatpush1.bf16.msra.mxu1 %v3059_v12  ;;  %678 = vmatprep.subr.bf16.mxu0 %v3060_v13  ;;  %v3074_v22 = vld [vmem:[#allocation5 + $0x2a4] ss:$16 sps:$4 sm:$0xff]   ;;  %v3076_v23 = vld [vmem:[#allocation5 + $0xa0] ss:$16 sps:$4 sm:$0xff]   ;;  %v3117_v54 = vld [vmem:[#allocation5 + $0x88] ss:$16 sps:$4 sm:$0xff]  }
  0x43   :  { %719 = vmatprep.subr.bf16.mxu1 %v3062_v14  ;;  %v3077_v24 = vld [vmem:[#allocation5 + $0x2a0] ss:$16 sps:$4 sm:$0xff]   ;;  %v3078_v25 = vld [vmem:[#allocation5 + $0xc4] ss:$16 sps:$4 sm:$0xff]   ;;  %v3125_v57 = vld [vmem:[#allocation5 + $0xac] ss:$16 sps:$4 sm:$0xff]  }
  0x44   :  { %v3080_v26 = vld [vmem:[#allocation5 + $0x2c4] ss:$16 sps:$4 sm:$0xff]   ;;  %v3082_v27 = vld [vmem:[#allocation5 + $0xc0] ss:$16 sps:$4 sm:$0xff]   ;;  %v3123_v58 = vld [vmem:[#allocation5 + $0xa8] ss:$16 sps:$4 sm:$0xff]  }
  0x45   :  { %679 = vmatpush1.bf16.msra.mxu0 %v3064_v15  ;;  %v3083_v28 = vld [vmem:[#allocation5 + $0x2c0] ss:$16 sps:$4 sm:$0xff]   ;;  %v3084_v29 = vld [vmem:[#allocation5 + $0xe4] ss:$16 sps:$4 sm:$0xff]   ;;  %v3131_v61 = vld [vmem:[#allocation5 + $0xcc] ss:$16 sps:$4 sm:$0xff]  }
  0x46   :  { %720 = vmatpush1.bf16.msra.mxu1 %v3065_v16  ;;  %680 = vmatprep.subr.bf16.mxu0 %v3066_v17  ;;  %v3086_v30 = vld [vmem:[#allocation5 + $0x2e4] ss:$16 sps:$4 sm:$0xff]   ;;  %v3088_v31 = vld [vmem:[#allocation5 + $0xe0] ss:$16 sps:$4 sm:$0xff]   ;;  %v3129_v62 = vld [vmem:[#allocation5 + $0xc8] ss:$16 sps:$4 sm:$0xff]  }
  0x47   :  { %721 = vmatprep.subr.bf16.mxu1 %v3068_v18  ;;  %v3089_v32 = vld [vmem:[#allocation5 + $0x2e0] ss:$16 sps:$4 sm:$0xff]   ;;  %v3090_v33 = vld [vmem:[#allocation5 + $0x104] ss:$16 sps:$4 sm:$0xff]   ;;  %v3137_v2 = vld [vmem:[#allocation5 + $0xec] ss:$16 sps:$4 sm:$0xff]  }
  0x48   :  { %v3096_v37 = vld [vmem:[#allocation5 + $0x100] ss:$16 sps:$4 sm:$0xff]   ;;  %v3097_v38 = vld [vmem:[#allocation5 + $0x124] ss:$16 sps:$4 sm:$0xff]   ;;  %v3135_v3 = vld [vmem:[#allocation5 + $0xe8] ss:$16 sps:$4 sm:$0xff]  }
  0x49   :  { %681 = vmatpush1.bf16.msra.mxu0 %v3070_v19  ;;  %v3102_v41 = vld [vmem:[#allocation5 + $0x120] ss:$16 sps:$4 sm:$0xff]   ;;  %v3103_v42 = vld [vmem:[#allocation5 + $0x144] ss:$16 sps:$4 sm:$0xff]   ;;  %v3143_v5 = vld [vmem:[#allocation5 + $0x10c] ss:$16 sps:$4 sm:$0xff]  }
  0x4a   :  { %722 = vmatpush1.bf16.msra.mxu1 %v3071_v20  ;;  %682 = vmatprep.subr.bf16.mxu0 %v3072_v21  ;;  %v3108_v45 = vld [vmem:[#allocation5 + $0x140] ss:$16 sps:$4 sm:$0xff]   ;;  %v3109_v46 = vld [vmem:[#allocation5 + $0x164] ss:$16 sps:$4 sm:$0xff]   ;;  %v3141_v7 = vld [vmem:[#allocation5 + $0x108] ss:$16 sps:$4 sm:$0xff]  }
  0x4b   :  { %723 = vmatprep.subr.bf16.mxu1 %v3074_v22  ;;  %v61_v49 = vld [vmem:[#allocation2] sm:$0xff]  ;;  %v3114_v50 = vld [vmem:[#allocation5 + $0x160] ss:$16 sps:$4 sm:$0xff]   ;;  %v3146_v8 = vld [vmem:[#allocation5 + $0x12c] ss:$16 sps:$4 sm:$0xff]  }
  0x4c   :  { %v3115_v51 = vld [vmem:[#allocation5 + $0x184] ss:$16 sps:$4 sm:$0xff]   ;;  %v2639_v52 = vcombine.high %v61_v49, %v61_v49  ;;  %v3120_v55 = vld [vmem:[#allocation5 + $0x180] ss:$16 sps:$4 sm:$0xff]   ;;  %v3682_v6 = vcombine.low %v61_v49, %v61_v49  ;;  %v3144_v11 = vld [vmem:[#allocation5 + $0x128] ss:$16 sps:$4 sm:$0xff]  }
  0x4d   :  { %683 = vmatpush1.bf16.msra.mxu0 %v3076_v23  ;;  %v3121_v56 = vld [vmem:[#allocation5 + $0x1a4] ss:$16 sps:$4 sm:$0xff]   ;;  %v3126_v59 = vld [vmem:[#allocation5 + $0x1a0] ss:$16 sps:$4 sm:$0xff]   ;;  %v3149_v12 = vld [vmem:[#allocation5 + $0x14c] ss:$16 sps:$4 sm:$0xff]  }
  0x4e   :  { %724 = vmatpush1.bf16.msra.mxu1 %v3077_v24  ;;  %684 = vmatprep.subr.bf16.mxu0 %v3078_v25  ;;  %v3127_v60 = vld [vmem:[#allocation5 + $0x1c4] ss:$16 sps:$4 sm:$0xff]   ;;  %v3132_v63 = vld [vmem:[#allocation5 + $0x1c0] ss:$16 sps:$4 sm:$0xff]   ;;  %v3197_v13 = vld [vmem:[#allocation7 + $0x3c] ss:$28 sps:$4 sm:$0xff]  }
  0x4f   :  { %725 = vmatprep.subr.bf16.mxu1 %v3080_v26  ;;  %704 = vmatprep.mubr.bf16.mxu0 %v2639_v52  ;;  %v3133_v1 = vld [vmem:[#allocation5 + $0x1e4] ss:$16 sps:$4 sm:$0xff]   ;;  %v3138_v4 = vld [vmem:[#allocation5 + $0x1e0] ss:$16 sps:$4 sm:$0xff]   ;;  %v3147_v16 = vld [vmem:[#allocation5 + $0x148] ss:$16 sps:$4 sm:$0xff]  }
  0x50   :  { %v3189_v9 = vld [vmem:[#allocation7] ss:$28 sps:$4 sm:$0xff]   ;;  %v3195_v14 = vld [vmem:[#allocation7 + $0x38] ss:$28 sps:$4 sm:$0xff]   ;;  %v3201_v18 = vld [vmem:[#allocation7 + $0x70] ss:$28 sps:$4 sm:$0xff]  }
  0x51   :  { %685 = vmatpush1.bf16.msra.mxu0 %v3082_v27  ;;  %v3191_v10 = vld [vmem:[#allocation7 + $0x4] ss:$28 sps:$4 sm:$0xff]   ;;  %v3203_v15 = vld [vmem:[#allocation7 + $0x74] ss:$28 sps:$4 sm:$0xff]   ;;  %v3152_v17 = vld [vmem:[#allocation5 + $0x16c] ss:$16 sps:$4 sm:$0xff]  }
  0x52   :  { %726 = vmatpush1.bf16.msra.mxu1 %v3083_v28  ;;  %686 = vmatprep.subr.bf16.mxu0 %v3084_v29  ;;  %v3209_v19 = vld [vmem:[#allocation7 + $0xac] ss:$28 sps:$4 sm:$0xff]   ;;  %v3215_v23 = vld [vmem:[#allocation7 + $0xe4] ss:$28 sps:$4 sm:$0xff]   ;;  %v3221_v27 = vld [vmem:[#allocation7 + $0x11c] ss:$28 sps:$4 sm:$0xff]  }
  0x53   :  { %727 = vmatprep.subr.bf16.mxu1 %v3086_v30  ;;  %v3150_v20 = vld [vmem:[#allocation5 + $0x168] ss:$16 sps:$4 sm:$0xff]   ;;  %v3155_v21 = vld [vmem:[#allocation5 + $0x18c] ss:$16 sps:$4 sm:$0xff]  }
  0x54   :  { %v3207_v22 = vld [vmem:[#allocation7 + $0xa8] ss:$28 sps:$4 sm:$0xff]   ;;  %v3158_v25 = vld [vmem:[#allocation5 + $0x1ac] ss:$16 sps:$4 sm:$0xff]   ;;  %v3219_v30 = vld [vmem:[#allocation7 + $0x118] ss:$28 sps:$4 sm:$0xff]  }
  0x55   :  { %687 = vmatpush1.bf16.msra.mxu0 %v3088_v31  ;;  %v3153_v24 = vld [vmem:[#allocation5 + $0x188] ss:$16 sps:$4 sm:$0xff]   ;;  %v3213_v26 = vld [vmem:[#allocation7 + $0xe0] ss:$28 sps:$4 sm:$0xff]  }
  0x56   :  { %728 = vmatpush1.bf16.msra.mxu1 %v3089_v32  ;;  %688 = vmatprep.subr.bf16.mxu0 %v3090_v33  ;;  %v3156_v28 = vld [vmem:[#allocation5 + $0x1a8] ss:$16 sps:$4 sm:$0xff]   ;;  %v3161_v29 = vld [vmem:[#allocation5 + $0x1cc] ss:$16 sps:$4 sm:$0xff]  }
  0x57   :  { %754 = vmatprep.subr.bf16.mxu1 %v3095_v34  ;;  %v3159_v31 = vld [vmem:[#allocation5 + $0x1c8] ss:$16 sps:$4 sm:$0xff]   ;;  %v3164_v32 = vld [vmem:[#allocation5 + $0x1ec] ss:$16 sps:$4 sm:$0xff]  }
  0x58   :  { %v3162_v33 = vld [vmem:[#allocation5 + $0x1e8] ss:$16 sps:$4 sm:$0xff]   ;;  %v3167_v34 = vld [vmem:[#allocation5 + $0x20c] ss:$16 sps:$4 sm:$0xff]  }
  0x59   :  { %746 = vmatmul.mubr.bf16.vlgmr.msra.gmra.mrb[0].mxu1 %v3679_v35  ;;  %689 = vmatpush1.bf16.msra.mxu0 %v3096_v37  ;;  %v3170_v37 = vld [vmem:[#allocation5 + $0x22c] ss:$16 sps:$4 sm:$0xff]   ;;  %v3183_v49 = vld [vmem:[#allocation5 + $0x2c8] ss:$16 sps:$4 sm:$0xff]  }
  0x5a   :  { %755 = vmatpush1.bf16.msra.mxu1 %v3093_v36  ;;  %690 = vmatprep.subr.bf16.mxu0 %v3097_v38  ;;  %v3165_v36 = vld [vmem:[#allocation5 + $0x208] ss:$16 sps:$4 sm:$0xff]  }
  0x5b   :  { %756 = vmatprep.subr.bf16.mxu1 %v3101_v39  ;;  %786 = vmatprep.mubr.bf16.mxu1 %v2639_v52  ;;  %v3168_v38 = vld [vmem:[#allocation5 + $0x228] ss:$16 sps:$4 sm:$0xff]   ;;  %v3173_v39 = vld [vmem:[#allocation5 + $0x24c] ss:$16 sps:$4 sm:$0xff]  }
  0x5c   :  { %v3233_v52 = vld [vmem:[#allocation7 + $0x18c] ss:$28 sps:$4 sm:$0xff]  }
  0x5d   :  { %691 = vmatpush1.bf16.msra.mxu0 %v3102_v41  ;;  %v3176_v41 = vld [vmem:[#allocation5 + $0x26c] ss:$16 sps:$4 sm:$0xff]  }
  0x5e   :  { %757 = vmatpush1.bf16.msra.mxu1 %v3099_v40  ;;  %692 = vmatprep.subr.bf16.mxu0 %v3103_v42  ;;  %v3171_v40 = vld [vmem:[#allocation5 + $0x248] ss:$16 sps:$4 sm:$0xff]  }
  0x5f   :  { %758 = vmatprep.subr.bf16.mxu1 %v3107_v43  ;;  %v3174_v42 = vld [vmem:[#allocation5 + $0x268] ss:$16 sps:$4 sm:$0xff]   ;;  %v3179_v43 = vld [vmem:[#allocation5 + $0x28c] ss:$16 sps:$4 sm:$0xff]  }
  0x61   :  { %693 = vmatpush1.bf16.msra.mxu0 %v3108_v45  ;;  %v3182_v45 = vld [vmem:[#allocation5 + $0x2ac] ss:$16 sps:$4 sm:$0xff]  }
  0x62   :  { %759 = vmatpush1.bf16.msra.mxu1 %v3105_v44  ;;  %694 = vmatprep.subr.bf16.mxu0 %v3109_v46  ;;  %v3177_v44 = vld [vmem:[#allocation5 + $0x288] ss:$16 sps:$4 sm:$0xff]  }
  0x63   :  { %760 = vmatprep.subr.bf16.mxu1 %v3113_v47  ;;  %v3180_v46 = vld [vmem:[#allocation5 + $0x2a8] ss:$16 sps:$4 sm:$0xff]   ;;  %v3185_v47 = vld [vmem:[#allocation5 + $0x2cc] ss:$16 sps:$4 sm:$0xff]  }
  0x65   :  { %695 = vmatpush1.bf16.msra.mxu0 %v3114_v50  ;;  %v3188_v50 = vld [vmem:[#allocation5 + $0x2ec] ss:$16 sps:$4 sm:$0xff]  }
  0x66   :  { %761 = vmatpush1.bf16.msra.mxu1 %v3111_v48  ;;  %696 = vmatprep.subr.bf16.mxu0 %v3115_v51  ;;  %v3227_v48 = vld [vmem:[#allocation7 + $0x154] ss:$28 sps:$4 sm:$0xff]   ;;  %v3231_v51 = vld [vmem:[#allocation7 + $0x188] ss:$28 sps:$4 sm:$0xff]  }
  0x67   :  { %762 = vmatprep.subr.bf16.mxu1 %v3119_v53  ;;  %v3239_v53 = vld [vmem:[#allocation7 + $0x1c4] ss:$28 sps:$4 sm:$0xff]  }
  0x69   :  { %697 = vmatpush1.bf16.msra.mxu0 %v3120_v55  ;;  %v3194_v55 = vld [vmem:[#allocation7 + $0xc] ss:$28 sps:$4 sm:$0xff]  }
  0x6a   :  { %763 = vmatpush1.bf16.msra.mxu1 %v3117_v54  ;;  %698 = vmatprep.subr.bf16.mxu0 %v3121_v56  ;;  %v3186_v54 = vld [vmem:[#allocation5 + $0x2e8] ss:$16 sps:$4 sm:$0xff]   ;;  %v3237_v56 = vld [vmem:[#allocation7 + $0x1c0] ss:$28 sps:$4 sm:$0xff]  }
  0x6b   :  { %764 = vmatprep.subr.bf16.mxu1 %v3125_v57  ;;  %v3245_v57 = vld [vmem:[#allocation7 + $0x1fc] ss:$28 sps:$4 sm:$0xff]  }
  0x6d   :  { %699 = vmatpush1.bf16.msra.mxu0 %v3126_v59  ;;  %v3200_v59 = vld [vmem:[#allocation7 + $0x44] ss:$28 sps:$4 sm:$0xff]  }
  0x6e   :  { %765 = vmatpush1.bf16.msra.mxu1 %v3123_v58  ;;  %700 = vmatprep.subr.bf16.mxu0 %v3127_v60  ;;  %v3192_v58 = vld [vmem:[#allocation7 + $0x8] ss:$28 sps:$4 sm:$0xff]   ;;  %v3243_v60 = vld [vmem:[#allocation7 + $0x1f8] ss:$28 sps:$4 sm:$0xff]  }
  0x6f   :  { %766 = vmatprep.subr.bf16.mxu1 %v3131_v61  ;;  %v3198_v61 = vld [vmem:[#allocation7 + $0x40] ss:$28 sps:$4 sm:$0xff]  }
  0x71   :  { %701 = vmatpush1.bf16.msra.mxu0 %v3132_v63  ;;  %v3206_v63 = vld [vmem:[#allocation7 + $0x7c] ss:$28 sps:$4 sm:$0xff]  }
  0x72   :  { %767 = vmatpush1.bf16.msra.mxu1 %v3129_v62  ;;  %702 = vmatprep.subr.bf16.mxu0 %v3133_v1  ;;  %v3251_v62 = vld [vmem:[#allocation7 + $0x234] ss:$28 sps:$4 sm:$0xff]  }
  0x73   :  { %768 = vmatprep.subr.bf16.mxu1 %v3137_v2  ;;  %v3249_v1 = vld [vmem:[#allocation7 + $0x230] ss:$28 sps:$4 sm:$0xff]  }
  0x74   :  { %v3257_v2 = vld [vmem:[#allocation7 + $0x26c] ss:$28 sps:$4 sm:$0xff]  }
  0x75   :  { %703 = vmatpush1.bf16.msra.mxu0 %v3138_v4  ;;  %v3212_v4 = vld [vmem:[#allocation7 + $0xb4] ss:$28 sps:$4 sm:$0xff]  }
  0x76   :  { %769 = vmatpush1.bf16.msra.mxu1 %v3135_v3  ;;  %2289 = vmatprep.subr.bf16.mxu0 %v3191_v10  ;;  %v3204_v3 = vld [vmem:[#allocation7 + $0x78] ss:$28 sps:$4 sm:$0xff]   ;;  %v3216_v10 = vld [vmem:[#allocation7 + $0xe8] ss:$28 sps:$4 sm:$0xff]  }
  0x77   :  { %770 = vmatprep.subr.bf16.mxu1 %v3143_v5  ;;  %v3255_v5 = vld [vmem:[#allocation7 + $0x268] ss:$28 sps:$4 sm:$0xff]  }
  0x78   :  { %705 = vmatmul.mubr.bf16.vlgmr.msra.gmra.mrb[0].mxu0 %v3682_v6 }
  0x79   :  { %2290 = vmatpush1.bf16.msra.mxu0 %v3189_v9  ;;  %v3261_v9 = vld [vmem:[#allocation7 + $0x2a0] ss:$28 sps:$4 sm:$0xff]  }
  0x7a   :  { %771 = vmatpush1.bf16.msra.mxu1 %v3141_v7  ;;  %2291 = vmatprep.subr.bf16.mxu0 %v3197_v13  ;;  %v3210_v7 = vld [vmem:[#allocation7 + $0xb0] ss:$28 sps:$4 sm:$0xff]   ;;  %v3222_v13 = vld [vmem:[#allocation7 + $0x120] ss:$28 sps:$4 sm:$0xff]  }
  0x7b   :  { %772 = vmatprep.subr.bf16.mxu1 %v3146_v8  ;;  %v3218_v8 = vld [vmem:[#allocation7 + $0xec] ss:$28 sps:$4 sm:$0xff]  }
  0x7d   :  { %2292 = vmatpush1.bf16.msra.mxu0 %v3195_v14  ;;  %v3230_v14 = vld [vmem:[#allocation7 + $0x15c] ss:$28 sps:$4 sm:$0xff]  }
  0x7e   :  { %773 = vmatpush1.bf16.msra.mxu1 %v3144_v11  ;;  %2293 = vmatprep.subr.bf16.mxu0 %v3203_v15  ;;  %v3224_v11 = vld [vmem:[#allocation7 + $0x124] ss:$28 sps:$4 sm:$0xff]   ;;  %v3228_v15 = vld [vmem:[#allocation7 + $0x158] ss:$28 sps:$4 sm:$0xff]  }
  0x7f   :  { %774 = vmatprep.subr.bf16.mxu1 %v3149_v12  ;;  %v3267_v12 = vld [vmem:[#allocation7 + $0x2d8] ss:$28 sps:$4 sm:$0xff]  }
  0x81   :  { %2294 = vmatpush1.bf16.msra.mxu0 %v3201_v18  ;;  %v3273_v18 = vld [vmem:[#allocation7 + $0x310] ss:$28 sps:$4 sm:$0xff]  }
  0x82   :  { %775 = vmatpush1.bf16.msra.mxu1 %v3147_v16  ;;  %2295 = vmatprep.subr.bf16.mxu0 %v3209_v19  ;;  %v3275_v16 = vld [vmem:[#allocation7 + $0x314] ss:$28 sps:$4 sm:$0xff]  }
  0x83   :  { %776 = vmatprep.subr.bf16.mxu1 %v3152_v17  ;;  %v3236_v17 = vld [vmem:[#allocation7 + $0x194] ss:$28 sps:$4 sm:$0xff]  }
  0x84   :  { %v3234_v19 = vld [vmem:[#allocation7 + $0x190] ss:$28 sps:$4 sm:$0xff]  }
  0x85   :  { %2296 = vmatpush1.bf16.msra.mxu0 %v3207_v22  ;;  %v3279_v22 = vld [vmem:[#allocation7 + $0x348] ss:$28 sps:$4 sm:$0xff]  }
  0x86   :  { %777 = vmatpush1.bf16.msra.mxu1 %v3150_v20  ;;  %2297 = vmatprep.subr.bf16.mxu0 %v3215_v23  ;;  %v3281_v20 = vld [vmem:[#allocation7 + $0x34c] ss:$28 sps:$4 sm:$0xff]   ;;  %v3287_v23 = vld [vmem:[#allocation7 + $0x384] ss:$28 sps:$4 sm:$0xff]  }
  0x87   :  { %778 = vmatprep.subr.bf16.mxu1 %v3155_v21  ;;  %v3242_v21 = vld [vmem:[#allocation7 + $0x1cc] ss:$28 sps:$4 sm:$0xff]  }
  0x89   :  { %2298 = vmatpush1.bf16.msra.mxu0 %v3213_v26  ;;  %v3246_v26 = vld [vmem:[#allocation7 + $0x200] ss:$28 sps:$4 sm:$0xff]  }
  0x8a   :  { %779 = vmatpush1.bf16.msra.mxu1 %v3153_v24  ;;  %2299 = vmatprep.subr.bf16.mxu0 %v3221_v27  ;;  %v3240_v24 = vld [vmem:[#allocation7 + $0x1c8] ss:$28 sps:$4 sm:$0xff]   ;;  %v3254_v27 = vld [vmem:[#allocation7 + $0x23c] ss:$28 sps:$4 sm:$0xff]  }
  0x8b   :  { %780 = vmatprep.subr.bf16.mxu1 %v3158_v25  ;;  %v3248_v25 = vld [vmem:[#allocation7 + $0x204] ss:$28 sps:$4 sm:$0xff]  }
  0x8d   :  { %2300 = vmatpush1.bf16.msra.mxu0 %v3219_v30  ;;  %v3258_v30 = vld [vmem:[#allocation7 + $0x270] ss:$28 sps:$4 sm:$0xff]  }
  0x8e   :  { %781 = vmatpush1.bf16.msra.mxu1 %v3156_v28  ;;  %2301 = vmatprep.subr.bf16.mxu0 %v3227_v48  ;;  %v3252_v28 = vld [vmem:[#allocation7 + $0x238] ss:$28 sps:$4 sm:$0xff]  }
  0x8f   :  { %782 = vmatprep.subr.bf16.mxu1 %v3161_v29  ;;  %v3260_v29 = vld [vmem:[#allocation7 + $0x274] ss:$28 sps:$4 sm:$0xff]  }
  0x90   :  { %v3694_v48 = vld [vmem:[%s3763_s2] sm:$0xf] }
  0x92   :  { %783 = vmatpush1.bf16.msra.mxu1 %v3159_v31  ;;  %v3266_v31 = vld [vmem:[#allocation7 + $0x2ac] ss:$28 sps:$4 sm:$0xff]  }
  0x93   :  { %784 = vmatprep.subr.bf16.mxu1 %v3164_v32  ;;  %v3264_v32 = vld [vmem:[#allocation7 + $0x2a8] ss:$28 sps:$4 sm:$0xff]  }
  0x96   :  { %785 = vmatpush1.bf16.msra.mxu1 %v3162_v33  ;;  %v3272_v33 = vld [vmem:[#allocation7 + $0x2e4] ss:$28 sps:$4 sm:$0xff]  }
  0x97   :  { %795 = vmatprep.subr.bf16.mxu1 %v3167_v34  ;;  %v3270_v34 = vld [vmem:[#allocation7 + $0x2e0] ss:$28 sps:$4 sm:$0xff]  }
  0x99   :  { %787 = vmatmul.mubr.bf16.vlgmr.msra.gmra.mrb[4].mxu1 %v3682_v6  ;;  %v3263_v6 = vld [vmem:[#allocation7 + $0x2a4] ss:$28 sps:$4 sm:$0xff]  }
  0x9a   :  { %796 = vmatpush1.bf16.msra.mxu1 %v3165_v36  ;;  %827 = vmatprep.mubr.bf16.mxu1 %v3610_v0  ;;  %v3225_v0 = vld [vmem:[#allocation7 + $0x150] ss:$28 sps:$4 sm:$0xff]   ;;  %v3278_v36 = vld [vmem:[#allocation7 + $0x31c] ss:$28 sps:$4 sm:$0xff]  }
  0x9b   :  { %797 = vmatprep.subr.bf16.mxu1 %v3170_v37  ;;  %2302 = vmatpush1.bf16.msra.mxu0 %v3225_v0  ;;  %v3276_v37 = vld [vmem:[#allocation7 + $0x318] ss:$28 sps:$4 sm:$0xff]  }
  0x9c   :  { %2303 = vmatprep.subr.bf16.mxu0 %v3233_v52 }
  0x9e   :  { %798 = vmatpush1.bf16.msra.mxu1 %v3168_v38  ;;  %v3284_v38 = vld [vmem:[#allocation7 + $0x354] ss:$28 sps:$4 sm:$0xff]  }
  0x9f   :  { %799 = vmatprep.subr.bf16.mxu1 %v3173_v39  ;;  %2304 = vmatpush1.bf16.msra.mxu0 %v3231_v51  ;;  %v3282_v39 = vld [vmem:[#allocation7 + $0x350] ss:$28 sps:$4 sm:$0xff]  }
  0xa0   :  { %2305 = vmatprep.subr.bf16.mxu0 %v3239_v53 }
  0xa2   :  { %800 = vmatpush1.bf16.msra.mxu1 %v3171_v40  ;;  %v3290_v40 = vld [vmem:[#allocation7 + $0x38c] ss:$28 sps:$4 sm:$0xff]  }
  0xa3   :  { %801 = vmatprep.subr.bf16.mxu1 %v3176_v41  ;;  %2306 = vmatpush1.bf16.msra.mxu0 %v3237_v56 }
  0xa4   :  { %2307 = vmatprep.subr.bf16.mxu0 %v3245_v57 }
  0xa6   :  { %802 = vmatpush1.bf16.msra.mxu1 %v3174_v42 }
  0xa7   :  { %803 = vmatprep.subr.bf16.mxu1 %v3179_v43  ;;  %2308 = vmatpush1.bf16.msra.mxu0 %v3243_v60 }
  0xa8   :  { %2309 = vmatprep.subr.bf16.mxu0 %v3251_v62  ;;  %v3285_v62 = vld [vmem:[#allocation7 + $0x380] ss:$28 sps:$4 sm:$0xff]  }
  0xaa   :  { %804 = vmatpush1.bf16.msra.mxu1 %v3177_v44 }
  0xab   :  { %805 = vmatprep.subr.bf16.mxu1 %v3182_v45  ;;  %2310 = vmatpush1.bf16.msra.mxu0 %v3249_v1  ;;  %v161_v45 = vlaneseq }
  0xac   :  { %2311 = vmatprep.subr.bf16.mxu0 %v3257_v2  ;;  %v3293_v2 = vld [vmem:[#allocation7 + $0x3bc] ss:$28 sps:$4 sm:$0xff]  }
  0xae   :  { %806 = vmatpush1.bf16.msra.mxu1 %v3180_v46  ;;  %v3688_v46 = vshrl.u32 %v161_v45, 7  ;;  %v3354_v45 = vld [vmem:[#allocation7 + $0x5f0] ss:$28 sps:$4 sm:$0xff]  }
  0xaf   :  { %807 = vmatprep.subr.bf16.mxu1 %v3185_v47  ;;  %2312 = vmatpush1.bf16.msra.mxu0 %v3255_v5  ;;  %v3294_v5 = vld [vmem:[#allocation7 + $0x3c0] ss:$28 sps:$4 sm:$0xff]  }
  0xb0   :  { %2313 = vmatprep.subr.bf16.mxu0 %v3263_v6  ;;  %v163_v47 = vsub.s32 0, %v3688_v46  ;;  %v3299_v6 = vld [vmem:[#allocation7 + $0x3f4] ss:$28 sps:$4 sm:$0xff]  }
  0xb2   :  { %808 = vmatpush1.bf16.msra.mxu1 %v3183_v49  ;;  %v167_v49 = vsub.s32 1, %v3688_v46  ;;  %v164_v0 = vrot.slane %v3694_v48, %v163_v47 }
  0xb3   :  { %809 = vmatprep.subr.bf16.mxu1 %v3188_v50  ;;  %2314 = vmatpush1.bf16.msra.mxu0 %v3261_v9  ;;  %v3300_v9 = vld [vmem:[#allocation7 + $0x3f8] ss:$28 sps:$4 sm:$0xff]  }
  0xb4   :  { %v168_v50 = vrot.slane %v3694_v48, %v167_v49 }
  0xb6   :  { %810 = vmatpush1.bf16.msra.mxu1 %v3186_v54 }
  0xb7   :  { %2371 = vmatprep.subr.bf16.mxu1 %v3194_v55 }
  0xb9   :  { %828 = vmatmul.mubr.bf16.vlgmr.msra.gmra.mrb[4].mxu1 %v3679_v35  ;;  %v3269_v35 = vld [vmem:[#allocation7 + $0x2dc] ss:$28 sps:$4 sm:$0xff]  }
  0xba   :  { %2372 = vmatpush1.bf16.msra.mxu1 %v3192_v58  ;;  %2315 = vmatprep.subr.bf16.mxu0 %v3269_v35  ;;  %v3305_v35 = vld [vmem:[#allocation7 + $0x42c] ss:$28 sps:$4 sm:$0xff]  }
  0xbb   :  { %2373 = vmatprep.subr.bf16.mxu1 %v3200_v59  ;;  %2316 = vmatpush1.bf16.msra.mxu0 %v3267_v12  ;;  %v3306_v12 = vld [vmem:[#allocation7 + $0x430] ss:$28 sps:$4 sm:$0xff]  }
  0xbc   :  { %2317 = vmatprep.subr.bf16.mxu0 %v3275_v16  ;;  %v3312_v16 = vld [vmem:[#allocation7 + $0x468] ss:$28 sps:$4 sm:$0xff]  }
  0xbe   :  { %2374 = vmatpush1.bf16.msra.mxu1 %v3198_v61 }
  0xbf   :  { %2375 = vmatprep.subr.bf16.mxu1 %v3206_v63  ;;  %2318 = vmatpush1.bf16.msra.mxu0 %v3273_v18  ;;  %v3288_v63 = vld [vmem:[#allocation7 + $0x388] ss:$28 sps:$4 sm:$0xff]  }
  0xc0   :  { %2319 = vmatprep.subr.bf16.mxu0 %v3281_v20  ;;  %v3320_v18 = vld [vmem:[#allocation7 + $0x4a4] ss:$28 sps:$4 sm:$0xff]  }
  0xc1   :  { %v3318_v20 = vld [vmem:[#allocation7 + $0x4a0] ss:$28 sps:$4 sm:$0xff]  }
  0xc2   :  { %2376 = vmatpush1.bf16.msra.mxu1 %v3204_v3  ;;  %v3296_v3 = vld [vmem:[#allocation7 + $0x3c4] ss:$28 sps:$4 sm:$0xff]  }
  0xc3   :  { %2377 = vmatprep.subr.bf16.mxu1 %v3212_v4  ;;  %2320 = vmatpush1.bf16.msra.mxu0 %v3279_v22  ;;  %v3291_v4 = vld [vmem:[#allocation7 + $0x3b8] ss:$28 sps:$4 sm:$0xff]  }
  0xc4   :  { %2330 = vmatprep.subr.bf16.mxu0 %v3287_v23  ;;  %v3326_v22 = vld [vmem:[#allocation7 + $0x4dc] ss:$28 sps:$4 sm:$0xff]   ;;  %v3321_v23 = vld [vmem:[#allocation7 + $0x4d0] ss:$28 sps:$4 sm:$0xff]  }
  0xc6   :  { %2378 = vmatpush1.bf16.msra.mxu1 %v3210_v7  ;;  %v3302_v7 = vld [vmem:[#allocation7 + $0x3fc] ss:$28 sps:$4 sm:$0xff]  }
  0xc7   :  { %2379 = vmatprep.subr.bf16.mxu1 %v3218_v8  ;;  %v3297_v8 = vld [vmem:[#allocation7 + $0x3f0] ss:$28 sps:$4 sm:$0xff]  }
  0xca   :  { %2380 = vmatpush1.bf16.msra.mxu1 %v3216_v10  ;;  %v3308_v10 = vld [vmem:[#allocation7 + $0x434] ss:$28 sps:$4 sm:$0xff]  }
  0xcb   :  { %2381 = vmatprep.subr.bf16.mxu1 %v3224_v11  ;;  %v3303_v11 = vld [vmem:[#allocation7 + $0x428] ss:$28 sps:$4 sm:$0xff]  }
  0xce   :  { %2382 = vmatpush1.bf16.msra.mxu1 %v3222_v13  ;;  %v3311_v13 = vld [vmem:[#allocation7 + $0x464] ss:$28 sps:$4 sm:$0xff]  }
  0xcf   :  { %2383 = vmatprep.subr.bf16.mxu1 %v3230_v14  ;;  %v3314_v14 = vld [vmem:[#allocation7 + $0x46c] ss:$28 sps:$4 sm:$0xff]  }
  0xd2   :  { %2384 = vmatpush1.bf16.msra.mxu1 %v3228_v15  ;;  %v3309_v15 = vld [vmem:[#allocation7 + $0x460] ss:$28 sps:$4 sm:$0xff]  }
  0xd3   :  { %2385 = vmatprep.subr.bf16.mxu1 %v3236_v17  ;;  %v3317_v17 = vld [vmem:[#allocation7 + $0x49c] ss:$28 sps:$4 sm:$0xff]  }
  0xd6   :  { %2386 = vmatpush1.bf16.msra.mxu1 %v3234_v19  ;;  %v3315_v19 = vld [vmem:[#allocation7 + $0x498] ss:$28 sps:$4 sm:$0xff]  }
  0xd7   :  { %2387 = vmatprep.subr.bf16.mxu1 %v3242_v21  ;;  %v3323_v21 = vld [vmem:[#allocation7 + $0x4d4] ss:$28 sps:$4 sm:$0xff]  }
  0xda   :  { %2388 = vmatpush1.bf16.msra.mxu1 %v3240_v24  ;;  %v3324_v24 = vld [vmem:[#allocation7 + $0x4d8] ss:$28 sps:$4 sm:$0xff]  }
  0xdb   :  { %2389 = vmatprep.subr.bf16.mxu1 %v3248_v25  ;;  %v3329_v25 = vld [vmem:[#allocation7 + $0x50c] ss:$28 sps:$4 sm:$0xff]  }
  0xde   :  { %2390 = vmatpush1.bf16.msra.mxu1 %v3246_v26  ;;  %v3332_v26 = vld [vmem:[#allocation7 + $0x514] ss:$28 sps:$4 sm:$0xff]  }
  0xdf   :  { %2391 = vmatprep.subr.bf16.mxu1 %v3254_v27  ;;  %v3327_v27 = vld [vmem:[#allocation7 + $0x508] ss:$28 sps:$4 sm:$0xff]  }
  0xe2   :  { %2392 = vmatpush1.bf16.msra.mxu1 %v3252_v28  ;;  %v3330_v28 = vld [vmem:[#allocation7 + $0x510] ss:$28 sps:$4 sm:$0xff]  }
  0xe3   :  { %2393 = vmatprep.subr.bf16.mxu1 %v3260_v29  ;;  %v3335_v29 = vld [vmem:[#allocation7 + $0x544] ss:$28 sps:$4 sm:$0xff]  }
  0xe6   :  { %2394 = vmatpush1.bf16.msra.mxu1 %v3258_v30  ;;  %v3338_v30 = vld [vmem:[#allocation7 + $0x54c] ss:$28 sps:$4 sm:$0xff]  }
  0xe7   :  { %2395 = vmatprep.subr.bf16.mxu1 %v3266_v31  ;;  %v3333_v31 = vld [vmem:[#allocation7 + $0x540] ss:$28 sps:$4 sm:$0xff]  }
  0xea   :  { %2396 = vmatpush1.bf16.msra.mxu1 %v3264_v32  ;;  %v3336_v32 = vld [vmem:[#allocation7 + $0x548] ss:$28 sps:$4 sm:$0xff]  }
  0xeb   :  { %2397 = vmatprep.subr.bf16.mxu1 %v3272_v33  ;;  %v3341_v33 = vld [vmem:[#allocation7 + $0x57c] ss:$28 sps:$4 sm:$0xff]  }
  0xee   :  { %2398 = vmatpush1.bf16.msra.mxu1 %v3270_v34  ;;  %v3344_v34 = vld [vmem:[#allocation7 + $0x584] ss:$28 sps:$4 sm:$0xff]  }
  0xef   :  { %2399 = vmatprep.subr.bf16.mxu1 %v3278_v36  ;;  %v3339_v36 = vld [vmem:[#allocation7 + $0x578] ss:$28 sps:$4 sm:$0xff]  }
  0xf2   :  { %2400 = vmatpush1.bf16.msra.mxu1 %v3276_v37  ;;  %v3342_v37 = vld [vmem:[#allocation7 + $0x580] ss:$28 sps:$4 sm:$0xff]  }
  0xf3   :  { %2401 = vmatprep.subr.bf16.mxu1 %v3284_v38  ;;  %v3347_v38 = vld [vmem:[#allocation7 + $0x5b4] ss:$28 sps:$4 sm:$0xff]  }
  0xf6   :  { %2402 = vmatpush1.bf16.msra.mxu1 %v3282_v39  ;;  %v3350_v39 = vld [vmem:[#allocation7 + $0x5bc] ss:$28 sps:$4 sm:$0xff]  }
  0xf7   :  { %2412 = vmatprep.subr.bf16.mxu1 %v3290_v40  ;;  %v3345_v40 = vld [vmem:[#allocation7 + $0x5b0] ss:$28 sps:$4 sm:$0xff]  }
 0x12c   :  { %v747_v41 = vpop.f32.mrb[0].mxu1 }
 0x12d   :  { %v749_v42 = vpop.f32.mrb[1].mxu1 }
 0x12e   :  { %v751_v43 = vpop.f32.mrb[2].mxu1 }
 0x12f   :  { %v752_v44 = vpop.f32.mrb[3].mxu1  ;;  %v3356_v43 = vld [vmem:[#allocation7 + $0x5f4] ss:$28 sps:$4 sm:$0xff]  }
 0x130   :  { %v3351_v44 = vld [vmem:[#allocation7 + $0x5e8] ss:$28 sps:$4 sm:$0xff]  }
 0x14b   :  { %v706_v51 = vpop.f32.mrb[0].mxu0 }
 0x14c   :  { %v707_v52 = vadd.f32 %v706_v51, %v164_v0  ;;  %v708_v53 = vpop.f32.mrb[1].mxu0  ;;  %v3359_v0 = vld [vmem:[#allocation7 + $0x624] ss:$28 sps:$4 sm:$0xff]  }
 0x14d   :  { %v709_v54 = vadd.f32 %v708_v53, %v168_v50  ;;  %v710_v55 = vpop.f32.mrb[2].mxu0  ;;  %v3362_v50 = vld [vmem:[#allocation7 + $0x62c] ss:$28 sps:$4 sm:$0xff]   ;;  %v3357_v51 = vld [vmem:[#allocation7 + $0x620] ss:$28 sps:$4 sm:$0xff]  }
 0x14e   :  { %v748_v56 = vadd.f32 %v747_v41, %v707_v52  ;;  %v711_v57 = vpop.f32.mrb[3].mxu0  ;;  %v3348_v41 = vld [vmem:[#allocation7 + $0x5b8] ss:$28 sps:$4 sm:$0xff]   ;;  %v3360_v52 = vld [vmem:[#allocation7 + $0x628] ss:$28 sps:$4 sm:$0xff]   ;;  %v171_v55 = vsub.s32 2, %v3688_v46 }
 0x14f   :  { %v750_v58 = vadd.f32 %v749_v42, %v709_v54  ;;  %v3353_v42 = vld [vmem:[#allocation7 + $0x5ec] ss:$28 sps:$4 sm:$0xff]   ;;  %v3365_v53 = vld [vmem:[#allocation7 + $0x65c] ss:$28 sps:$4 sm:$0xff]   ;;  %v3368_v54 = vld [vmem:[#allocation7 + $0x664] ss:$28 sps:$4 sm:$0xff]  }
 0x150   :  { %v836_v59 = vmax.f32 %v748_v56, 0.0  ;;  %v175_v56 = vsub.s32 3, %v3688_v46  ;;  %v3363_v57 = vld [vmem:[#allocation7 + $0x658] ss:$28 sps:$4 sm:$0xff]  }
 0x151   :  { %v837_v60 = vmax.f32 %v750_v58, 0.0  ;;  %v3366_v58 = vld [vmem:[#allocation7 + $0x660] ss:$28 sps:$4 sm:$0xff]  }
 0x152   :  { %v3705_v1 = vpack.c.bf16 %v836_v59, %v836_v59  ;;  %v172_v59 = vrot.slane %v3694_v48, %v171_v55 }
 0x153   :  { %v3703_v61 = vpack.c.bf16 %v837_v60, %v837_v60  ;;  %v3371_v60 = vld [vmem:[#allocation7 + $0x694] ss:$28 sps:$4 sm:$0xff]  }
 0x155   :  { %2321 = vmatprep.mubr.bf16.mxu0 %v3703_v61  ;;  %2403 = vmatprep.mubr.bf16.mxu1 %v3703_v61 }
 0x156   :  { %2322 = vmatmul.mubr.bf16.vlgmr.msra.gmra.mrb[4].mxu0 %v3705_v1  ;;  %2404 = vmatmul.mubr.bf16.vlgmr.msra.gmra.mrb[8].mxu1 %v3705_v1 }
 0x157   :  { %2331 = vmatpush1.bf16.msra.mxu0 %v3285_v62  ;;  %2413 = vmatpush1.bf16.msra.mxu1 %v3288_v63  ;;  %v3374_v62 = vld [vmem:[#allocation7 + $0x69c] ss:$28 sps:$4 sm:$0xff]   ;;  %v176_v63 = vrot.slane %v3694_v48, %v175_v56 }
 0x158   :  { %2332 = vmatprep.subr.bf16.mxu0 %v3293_v2  ;;  %2414 = vmatprep.subr.bf16.mxu1 %v3296_v3  ;;  %v3369_v3 = vld [vmem:[#allocation7 + $0x690] ss:$28 sps:$4 sm:$0xff]  }
 0x15b   :  { %2333 = vmatpush1.bf16.msra.mxu0 %v3291_v4  ;;  %2415 = vmatpush1.bf16.msra.mxu1 %v3294_v5  ;;  %v3372_v4 = vld [vmem:[#allocation7 + $0x698] ss:$28 sps:$4 sm:$0xff]  }
 0x15c   :  { %2334 = vmatprep.subr.bf16.mxu0 %v3299_v6  ;;  %2416 = vmatprep.subr.bf16.mxu1 %v3302_v7  ;;  %v3377_v7 = vld [vmem:[#allocation7 + $0x6cc] ss:$28 sps:$4 sm:$0xff]  }
 0x15f   :  { %2335 = vmatpush1.bf16.msra.mxu0 %v3297_v8  ;;  %2417 = vmatpush1.bf16.msra.mxu1 %v3300_v9  ;;  %v3380_v8 = vld [vmem:[#allocation7 + $0x6d4] ss:$28 sps:$4 sm:$0xff]  }
 0x160   :  { %2336 = vmatprep.subr.bf16.mxu0 %v3305_v35  ;;  %2418 = vmatprep.subr.bf16.mxu1 %v3308_v10 }
 0x163   :  { %2337 = vmatpush1.bf16.msra.mxu0 %v3303_v11  ;;  %2419 = vmatpush1.bf16.msra.mxu1 %v3306_v12  ;;  %v3375_v12 = vld [vmem:[#allocation7 + $0x6c8] ss:$28 sps:$4 sm:$0xff]  }
 0x164   :  { %2338 = vmatprep.subr.bf16.mxu0 %v3311_v13  ;;  %2420 = vmatprep.subr.bf16.mxu1 %v3314_v14  ;;  %v3378_v13 = vld [vmem:[#allocation7 + $0x6d0] ss:$28 sps:$4 sm:$0xff]  }
 0x167   :  { %2339 = vmatpush1.bf16.msra.mxu0 %v3309_v15  ;;  %2421 = vmatpush1.bf16.msra.mxu1 %v3312_v16  ;;  %v3383_v15 = vld [vmem:[#allocation7 + $0x14] ss:$28 sps:$4 sm:$0xff]  }
 0x168   :  { %2340 = vmatprep.subr.bf16.mxu0 %v3317_v17  ;;  %2422 = vmatprep.subr.bf16.mxu1 %v3320_v18  ;;  %v3384_v16 = vld [vmem:[#allocation7 + $0x1d8] ss:$28 sps:$4 sm:$0xff]   ;;  %v3381_v17 = vld [vmem:[#allocation7 + $0x10] ss:$28 sps:$4 sm:$0xff]  }
 0x16b   :  { %2341 = vmatpush1.bf16.msra.mxu0 %v3315_v19  ;;  %2423 = vmatpush1.bf16.msra.mxu1 %v3318_v20  ;;  %v3385_v19 = vld [vmem:[#allocation7 + $0x18] ss:$28 sps:$4 sm:$0xff]   ;;  %v3388_v20 = vld [vmem:[#allocation7 + $0x4c] ss:$28 sps:$4 sm:$0xff]  }
 0x16c   :  { %2342 = vmatprep.subr.bf16.mxu0 %v3323_v21  ;;  %2424 = vmatprep.subr.bf16.mxu1 %v3326_v22  ;;  %v3389_v21 = vld [vmem:[#allocation7 + $0x210] ss:$28 sps:$4 sm:$0xff]   ;;  %v3386_v22 = vld [vmem:[#allocation7 + $0x48] ss:$28 sps:$4 sm:$0xff]  }
 0x16f   :  { %2343 = vmatpush1.bf16.msra.mxu0 %v3321_v23  ;;  %2425 = vmatpush1.bf16.msra.mxu1 %v3324_v24  ;;  %v3390_v23 = vld [vmem:[#allocation7 + $0x50] ss:$28 sps:$4 sm:$0xff]   ;;  %v3393_v24 = vld [vmem:[#allocation7 + $0x84] ss:$28 sps:$4 sm:$0xff]  }
 0x170   :  { %2344 = vmatprep.subr.bf16.mxu0 %v3329_v25  ;;  %2426 = vmatprep.subr.bf16.mxu1 %v3332_v26  ;;  %v3394_v25 = vld [vmem:[#allocation7 + $0x248] ss:$28 sps:$4 sm:$0xff]   ;;  %v3391_v26 = vld [vmem:[#allocation7 + $0x80] ss:$28 sps:$4 sm:$0xff]  }
 0x173   :  { %2345 = vmatpush1.bf16.msra.mxu0 %v3327_v27  ;;  %2427 = vmatpush1.bf16.msra.mxu1 %v3330_v28  ;;  %v3395_v27 = vld [vmem:[#allocation7 + $0x88] ss:$28 sps:$4 sm:$0xff]   ;;  %v3398_v28 = vld [vmem:[#allocation7 + $0xbc] ss:$28 sps:$4 sm:$0xff]  }
 0x174   :  { %2346 = vmatprep.subr.bf16.mxu0 %v3335_v29  ;;  %2428 = vmatprep.subr.bf16.mxu1 %v3338_v30  ;;  %v3399_v29 = vld [vmem:[#allocation7 + $0x280] ss:$28 sps:$4 sm:$0xff]   ;;  %v3396_v30 = vld [vmem:[#allocation7 + $0xb8] ss:$28 sps:$4 sm:$0xff]  }
 0x177   :  { %2347 = vmatpush1.bf16.msra.mxu0 %v3333_v31  ;;  %2429 = vmatpush1.bf16.msra.mxu1 %v3336_v32  ;;  %v3400_v31 = vld [vmem:[#allocation7 + $0xc0] ss:$28 sps:$4 sm:$0xff]   ;;  %v3403_v32 = vld [vmem:[#allocation7 + $0xf4] ss:$28 sps:$4 sm:$0xff]  }
 0x178   :  { %2348 = vmatprep.subr.bf16.mxu0 %v3341_v33  ;;  %2430 = vmatprep.subr.bf16.mxu1 %v3344_v34  ;;  %v3401_v33 = vld [vmem:[#allocation7 + $0xf0] ss:$28 sps:$4 sm:$0xff]   ;;  %v3405_v34 = vld [vmem:[#allocation7 + $0xf8] ss:$28 sps:$4 sm:$0xff]  }
 0x17b   :  { %2349 = vmatpush1.bf16.msra.mxu0 %v3339_v36  ;;  %2431 = vmatpush1.bf16.msra.mxu1 %v3342_v37  ;;  %v3408_v36 = vld [vmem:[#allocation7 + $0x12c] ss:$28 sps:$4 sm:$0xff]  }
 0x17c   :  { %2350 = vmatprep.subr.bf16.mxu0 %v3347_v38  ;;  %2432 = vmatprep.subr.bf16.mxu1 %v3350_v39  ;;  %v3409_v37 = vld [vmem:[#allocation7 + $0x2f0] ss:$28 sps:$4 sm:$0xff]   ;;  %v3406_v38 = vld [vmem:[#allocation7 + $0x128] ss:$28 sps:$4 sm:$0xff]  }
 0x17d   :  { %v3410_v39 = vld [vmem:[#allocation7 + $0x130] ss:$28 sps:$4 sm:$0xff]  }
 0x17f   :  { %2351 = vmatpush1.bf16.msra.mxu0 %v3345_v40  ;;  %2433 = vmatpush1.bf16.msra.mxu1 %v3348_v41  ;;  %v3413_v40 = vld [vmem:[#allocation7 + $0x164] ss:$28 sps:$4 sm:$0xff]  }
 0x180   :  { %2352 = vmatprep.subr.bf16.mxu0 %v3353_v42  ;;  %2434 = vmatprep.subr.bf16.mxu1 %v3356_v43  ;;  %v3414_v41 = vld [vmem:[#allocation7 + $0x328] ss:$28 sps:$4 sm:$0xff]   ;;  %v3411_v42 = vld [vmem:[#allocation7 + $0x160] ss:$28 sps:$4 sm:$0xff]  }
 0x181   :  { %v3415_v43 = vld [vmem:[#allocation7 + $0x168] ss:$28 sps:$4 sm:$0xff]  }
 0x183   :  { %2353 = vmatpush1.bf16.msra.mxu0 %v3351_v44  ;;  %2435 = vmatpush1.bf16.msra.mxu1 %v3354_v45  ;;  %v3418_v44 = vld [vmem:[#allocation7 + $0x19c] ss:$28 sps:$4 sm:$0xff]  }
 0x184   :  { %2354 = vmatprep.subr.bf16.mxu0 %v3359_v0  ;;  %2436 = vmatprep.subr.bf16.mxu1 %v3362_v50  ;;  %v3419_v45 = vld [vmem:[#allocation7 + $0x360] ss:$28 sps:$4 sm:$0xff]   ;;  %v3416_v0 = vld [vmem:[#allocation7 + $0x198] ss:$28 sps:$4 sm:$0xff]  }
 0x185   :  { %v3420_v50 = vld [vmem:[#allocation7 + $0x1a0] ss:$28 sps:$4 sm:$0xff]  }
 0x187   :  { %2355 = vmatpush1.bf16.msra.mxu0 %v3357_v51  ;;  %2437 = vmatpush1.bf16.msra.mxu1 %v3360_v52  ;;  %v3423_v51 = vld [vmem:[#allocation7 + $0x1d4] ss:$28 sps:$4 sm:$0xff]  }
 0x188   :  { %2356 = vmatprep.subr.bf16.mxu0 %v3365_v53  ;;  %2438 = vmatprep.subr.bf16.mxu1 %v3368_v54  ;;  %v3424_v52 = vld [vmem:[#allocation7 + $0x558] ss:$28 sps:$4 sm:$0xff]   ;;  %v3421_v53 = vld [vmem:[#allocation7 + $0x1d0] ss:$28 sps:$4 sm:$0xff]  }
 0x189   :  { %v3425_v54 = vld [vmem:[#allocation7 + $0x398] ss:$28 sps:$4 sm:$0xff]  }
 0x18b   :  { %2357 = vmatpush1.bf16.msra.mxu0 %v3363_v57  ;;  %2439 = vmatpush1.bf16.msra.mxu1 %v3366_v58  ;;  %v3428_v57 = vld [vmem:[#allocation7 + $0x20c] ss:$28 sps:$4 sm:$0xff]  }
 0x18c   :  { %v829_v2 = vpop.f32.mrb[4].mxu1  ;;  %2358 = vmatprep.subr.bf16.mxu0 %v3371_v60  ;;  %2440 = vmatprep.subr.bf16.mxu1 %v3374_v62  ;;  %v3429_v58 = vld [vmem:[#allocation7 + $0x590] ss:$28 sps:$4 sm:$0xff]   ;;  %v3433_v62 = vld [vmem:[#allocation7 + $0x244] ss:$28 sps:$4 sm:$0xff]  }
 0x18d   :  { %v3009_v5 = vadd.f32 %v829_v2, %v172_v59  ;;  %v831_v6 = vpop.f32.mrb[5].mxu1  ;;  %v3426_v59 = vld [vmem:[#allocation7 + $0x208] ss:$28 sps:$4 sm:$0xff]   ;;  %v3430_v60 = vld [vmem:[#allocation7 + $0x3d0] ss:$28 sps:$4 sm:$0xff]  }
 0x18e   :  { %v3010_v9 = vadd.f32 %v831_v6, %v176_v63  ;;  %v833_v35 = vpop.f32.mrb[6].mxu1  ;;  %v3434_v63 = vld [vmem:[#allocation7 + $0x5c8] ss:$28 sps:$4 sm:$0xff]   ;;  %v3431_v2 = vld [vmem:[#allocation7 + $0x240] ss:$28 sps:$4 sm:$0xff]  }
 0x18f   :  { %v834_v10 = vpop.f32.mrb[7].mxu1  ;;  %2359 = vmatpush1.bf16.msra.mxu0 %v3369_v3  ;;  %2441 = vmatpush1.bf16.msra.mxu1 %v3372_v4  ;;  %v838_v48 = vmax.f32 %v3009_v5, 0.0  ;;  %v3435_v3 = vld [vmem:[#allocation7 + $0x408] ss:$28 sps:$4 sm:$0xff]   ;;  %v3438_v4 = vld [vmem:[#allocation7 + $0x27c] ss:$28 sps:$4 sm:$0xff]  }
 0x190   :  { %v839_v11 = vmax.f32 %v3010_v9, 0.0  ;;  %2360 = vmatprep.subr.bf16.mxu0 %v3377_v7  ;;  %2442 = vmatprep.subr.bf16.mxu1 %v3380_v8  ;;  %v3439_v5 = vld [vmem:[#allocation7 + $0x600] ss:$28 sps:$4 sm:$0xff]   ;;  %v3436_v6 = vld [vmem:[#allocation7 + $0x278] ss:$28 sps:$4 sm:$0xff]  }
 0x191   :  { %v3721_v18 = vpack.c.bf16 %v838_v48, %v838_v48  ;;  %v3440_v7 = vld [vmem:[#allocation7 + $0x440] ss:$28 sps:$4 sm:$0xff]   ;;  %v3443_v8 = vld [vmem:[#allocation7 + $0x2b4] ss:$28 sps:$4 sm:$0xff]  }
 0x192   :  { %v3719_v14 = vpack.c.bf16 %v839_v11, %v839_v11  ;;  %v3444_v9 = vld [vmem:[#allocation7 + $0x638] ss:$28 sps:$4 sm:$0xff]   ;;  %v3441_v35 = vld [vmem:[#allocation7 + $0x2b0] ss:$28 sps:$4 sm:$0xff]  }
 0x193   :  { %2361 = vmatpush1.bf16.msra.mxu0 %v3375_v12  ;;  %2443 = vmatpush1.bf16.msra.mxu1 %v3378_v13  ;;  %v3445_v10 = vld [vmem:[#allocation7 + $0x478] ss:$28 sps:$4 sm:$0xff]   ;;  %v3448_v11 = vld [vmem:[#allocation7 + $0x2ec] ss:$28 sps:$4 sm:$0xff]  }
 0x194   :  { %2362 = vmatprep.mubr.bf16.mxu0 %v3719_v14  ;;  %2444 = vmatprep.mubr.bf16.mxu1 %v3719_v14  ;;  %v3449_v12 = vld [vmem:[#allocation7 + $0x670] ss:$28 sps:$4 sm:$0xff]   ;;  %v3446_v13 = vld [vmem:[#allocation7 + $0x2e8] ss:$28 sps:$4 sm:$0xff]  }
 0x195   :  { %2453 = vmatprep.subr.bf16.mxu0 %v3383_v15  ;;  %2961 = vmatprep.subr.bf16.mxu1 %v3384_v16  ;;  %v3450_v48 = vld [vmem:[#allocation7 + $0x4b0] ss:$28 sps:$4 sm:$0xff]   ;;  %v3453_v15 = vld [vmem:[#allocation7 + $0x324] ss:$28 sps:$4 sm:$0xff]  }
 0x196   :  { %2363 = vmatmul.mubr.bf16.vlgmr.msra.gmra.mrb[4].mxu0 %v3721_v18  ;;  %2445 = vmatmul.mubr.bf16.vlgmr.msra.gmra.mrb[8].mxu1 %v3721_v18  ;;  %v3454_v16 = vld [vmem:[#allocation7 + $0x6a8] ss:$28 sps:$4 sm:$0xff]  }
 0x197   :  { %2454 = vmatpush1.bf16.msra.mxu0 %v3381_v17  ;;  %2485 = vmatprep.mubr.bf16.mxu0 %v3703_v61  ;;  %v3451_v17 = vld [vmem:[#allocation7 + $0x320] ss:$28 sps:$4 sm:$0xff]  }
 0x198   :  { %2962 = vmatpush3.bf16.msra.mxu1 %v3385_v19  ;;  %2567 = vmatprep.mubr.bf16.mxu1 %v3703_v61  ;;  %v3404_v61 = vld [vmem:[#allocation7 + $0x2b8] ss:$28 sps:$4 sm:$0xff]   ;;  %v3455_v19 = vld [vmem:[#allocation7 + $0x4e8] ss:$28 sps:$4 sm:$0xff]  }
 0x199   :  { %2455 = vmatprep.subr.bf16.mxu0 %v3388_v20  ;;  %2963 = vmatprep.subr.bf16.mxu1 %v3389_v21  ;;  %v3458_v20 = vld [vmem:[#allocation7 + $0x35c] ss:$28 sps:$4 sm:$0xff]  }
 0x19a   :  { %v3459_v21 = vld [vmem:[#allocation7 + $0x6e0] ss:$28 sps:$4 sm:$0xff]  }
 0x19b   :  { %2456 = vmatpush1.bf16.msra.mxu0 %v3386_v22  ;;  %v3456_v22 = vld [vmem:[#allocation7 + $0x358] ss:$28 sps:$4 sm:$0xff]  }
 0x19c   :  { %2964 = vmatpush3.bf16.msra.mxu1 %v3390_v23  ;;  %2457 = vmatprep.subr.bf16.mxu0 %v3393_v24  ;;  %v3460_v23 = vld [vmem:[#allocation7 + $0x520] ss:$28 sps:$4 sm:$0xff]   ;;  %v3463_v24 = vld [vmem:[#allocation7 + $0x394] ss:$28 sps:$4 sm:$0xff]  }
 0x19d   :  { %2965 = vmatprep.subr.bf16.mxu1 %v3394_v25  ;;  %v3461_v25 = vld [vmem:[#allocation7 + $0x390] ss:$28 sps:$4 sm:$0xff]  }
 0x19f   :  { %2458 = vmatpush1.bf16.msra.mxu0 %v3391_v26  ;;  %v3466_v26 = vld [vmem:[#allocation7 + $0x3cc] ss:$28 sps:$4 sm:$0xff]  }
 0x1a0   :  { %2966 = vmatpush3.bf16.msra.mxu1 %v3395_v27  ;;  %2459 = vmatprep.subr.bf16.mxu0 %v3398_v28  ;;  %v3464_v27 = vld [vmem:[#allocation7 + $0x3c8] ss:$28 sps:$4 sm:$0xff]  }
 0x1a1   :  { %2967 = vmatprep.subr.bf16.mxu1 %v3399_v29  ;;  %v3469_v28 = vld [vmem:[#allocation7 + $0x404] ss:$28 sps:$4 sm:$0xff]  }
 0x1a2   :  { %v3467_v29 = vld [vmem:[#allocation7 + $0x400] ss:$28 sps:$4 sm:$0xff]  }
 0x1a3   :  { %2460 = vmatpush1.bf16.msra.mxu0 %v3396_v30  ;;  %v3472_v30 = vld [vmem:[#allocation7 + $0x43c] ss:$28 sps:$4 sm:$0xff]  }
 0x1a4   :  { %2968 = vmatpush3.bf16.msra.mxu1 %v3400_v31  ;;  %2461 = vmatprep.subr.bf16.mxu0 %v3403_v32  ;;  %v3470_v31 = vld [vmem:[#allocation7 + $0x438] ss:$28 sps:$4 sm:$0xff]  }
 0x1a5   :  { %2969 = vmatprep.subr.bf16.mxu1 %v3404_v61  ;;  %v3475_v32 = vld [vmem:[#allocation7 + $0x474] ss:$28 sps:$4 sm:$0xff]  }
 0x1a6   :  { %v3473_v61 = vld [vmem:[#allocation7 + $0x470] ss:$28 sps:$4 sm:$0xff]  }
 0x1a7   :  { %2462 = vmatpush1.bf16.msra.mxu0 %v3401_v33  ;;  %v3476_v33 = vld [vmem:[#allocation7 + $0x4a8] ss:$28 sps:$4 sm:$0xff]  }
 0x1a8   :  { %2970 = vmatpush3.bf16.msra.mxu1 %v3405_v34  ;;  %2463 = vmatprep.subr.bf16.mxu0 %v3408_v36  ;;  %v3481_v34 = vld [vmem:[#allocation7 + $0x4e4] ss:$28 sps:$4 sm:$0xff]   ;;  %v3484_v36 = vld [vmem:[#allocation7 + $0x51c] ss:$28 sps:$4 sm:$0xff]  }
 0x1a9   :  { %2971 = vmatprep.subr.bf16.mxu1 %v3409_v37  ;;  %v3482_v37 = vld [vmem:[#allocation7 + $0x518] ss:$28 sps:$4 sm:$0xff]  }
 0x1ab   :  { %2464 = vmatpush1.bf16.msra.mxu0 %v3406_v38  ;;  %v3487_v38 = vld [vmem:[#allocation7 + $0x554] ss:$28 sps:$4 sm:$0xff]  }
 0x1ac   :  { %2972 = vmatpush3.bf16.msra.mxu1 %v3410_v39  ;;  %2465 = vmatprep.subr.bf16.mxu0 %v3413_v40  ;;  %v3485_v39 = vld [vmem:[#allocation7 + $0x550] ss:$28 sps:$4 sm:$0xff]  }
 0x1ad   :  { %2973 = vmatprep.subr.bf16.mxu1 %v3414_v41  ;;  %v3490_v40 = vld [vmem:[#allocation7 + $0x58c] ss:$28 sps:$4 sm:$0xff]  }
 0x1ae   :  { %v3488_v41 = vld [vmem:[#allocation7 + $0x588] ss:$28 sps:$4 sm:$0xff]  }
 0x1af   :  { %2466 = vmatpush1.bf16.msra.mxu0 %v3411_v42  ;;  %v3493_v42 = vld [vmem:[#allocation7 + $0x5c4] ss:$28 sps:$4 sm:$0xff]  }
 0x1b0   :  { %2974 = vmatpush3.bf16.msra.mxu1 %v3415_v43  ;;  %2467 = vmatprep.subr.bf16.mxu0 %v3418_v44  ;;  %v3491_v43 = vld [vmem:[#allocation7 + $0x5c0] ss:$28 sps:$4 sm:$0xff]  }
 0x1b1   :  { %2975 = vmatprep.subr.bf16.mxu1 %v3419_v45  ;;  %v3496_v44 = vld [vmem:[#allocation7 + $0x5fc] ss:$28 sps:$4 sm:$0xff]  }
 0x1b2   :  { %v3494_v45 = vld [vmem:[#allocation7 + $0x5f8] ss:$28 sps:$4 sm:$0xff]  }
 0x1b3   :  { %2468 = vmatpush1.bf16.msra.mxu0 %v3416_v0  ;;  %v3499_v0 = vld [vmem:[#allocation7 + $0x634] ss:$28 sps:$4 sm:$0xff]  }
 0x1b4   :  { %2976 = vmatpush3.bf16.msra.mxu1 %v3420_v50  ;;  %2469 = vmatprep.subr.bf16.mxu0 %v3423_v51  ;;  %v3497_v50 = vld [vmem:[#allocation7 + $0x630] ss:$28 sps:$4 sm:$0xff]  }
 0x1b5   :  { %2983 = vmatprep.subr.bf16.mxu1 %v3424_v52  ;;  %v3502_v51 = vld [vmem:[#allocation7 + $0x66c] ss:$28 sps:$4 sm:$0xff]  }
 0x1b6   :  { %v3500_v52 = vld [vmem:[#allocation7 + $0x668] ss:$28 sps:$4 sm:$0xff]  }
 0x1b7   :  { %2568 = vmatmul.mubr.bf16.vlgmr.msra.gmra.mrb[12].mxu1 %v3705_v1  ;;  %2470 = vmatpush1.bf16.msra.mxu0 %v3421_v53  ;;  %v3505_v53 = vld [vmem:[#allocation7 + $0x6a4] ss:$28 sps:$4 sm:$0xff]  }
 0x1b8   :  { %2984 = vmatpush3.bf16.msra.mxu1 %v3425_v54  ;;  %2607 = vmatprep.mubr.bf16.mxu1 %v3719_v14  ;;  %v3503_v54 = vld [vmem:[#allocation7 + $0x6a0] ss:$28 sps:$4 sm:$0xff]  }
 0x1b9   :  { %2471 = vmatprep.subr.bf16.mxu0 %v3428_v57  ;;  %2985 = vmatprep.subr.bf16.mxu1 %v3429_v58  ;;  %v3508_v57 = vld [vmem:[#allocation7 + $0x6dc] ss:$28 sps:$4 sm:$0xff]  }
 0x1ba   :  { %v3506_v58 = vld [vmem:[#allocation7 + $0x6d8] ss:$28 sps:$4 sm:$0xff]  }
 0x1bb   :  { %2472 = vmatpush1.bf16.msra.mxu0 %v3426_v59  ;;  %v1100_v59 = vld [vmem:[%s3765_s4] sm:$0xff]  ;;  %s3611_s4 = smov [#allocation8]  }
 0x1bc   :  { %2986 = vmatpush3.bf16.msra.mxu1 %v3430_v60  ;;  %2473 = vmatprep.subr.bf16.mxu0 %v3433_v62  ;;  %v1105_v60 = vrot.slane %v1100_v59, %v163_v47  ;;  %v1113_v62 = vrot.slane %v1100_v59, %v171_v55  ;;  %s2628_s8 = sshll.u32 %s3611_s4, 4  ;;  %s2629_s8 = int_to_ptr.vmem [resolvable:$true] %s2628_s8 }
 0x1bd   :  { %2987 = vmatprep.subr.bf16.mxu1 %v3434_v63  ;;  %v1109_v63 = vrot.slane %v1100_v59, %v167_v49  ;;  %s3575_s9 = scalar_lea.vmem %s2629_s8, 896  ;;  %p3580_p11 = scmp.lt.s32.totalorder %s2629_s8, %s2629_s8 }
 0x1be   :  { %p3576_p10 = scmp.ne.s32.totalorder %s2629_s8, %s3575_s9  ;;  %p3581_p12 = scmp.lt.s32.totalorder %s3575_s9, %s3575_s9 }
 0x1bf   :  { %2474 = vmatpush1.bf16.msra.mxu0 %v3431_v2  ;;  %v1117_v2 = vrot.slane %v1100_v59, %v175_v56 }
 0x1c0   :  { %2988 = vmatpush3.bf16.msra.mxu1 %v3435_v3  ;;  %2475 = vmatprep.subr.bf16.mxu0 %v3438_v4  ;;  %p3582_p13 = por %p3581_p12, %p3580_p11 }
 0x1c1   :  { %2989 = vmatprep.subr.bf16.mxu1 %v3439_v5 }
 0x1c2   :  { %p3583_p0 = pnand %p3582_p13, %p3576_p10 }
 0x1c3   :  { %2476 = vmatpush1.bf16.msra.mxu0 %v3436_v6 }
 0x1c4   :  { %2990 = vmatpush3.bf16.msra.mxu1 %v3440_v7  ;;  %2477 = vmatprep.subr.bf16.mxu0 %v3443_v8 }
 0x1c5   :  { %2991 = vmatprep.subr.bf16.mxu1 %v3444_v9 }
 0x1c7   :  { %2478 = vmatpush1.bf16.msra.mxu0 %v3441_v35 }
 0x1c8   :  { %2992 = vmatpush3.bf16.msra.mxu1 %v3445_v10  ;;  %2479 = vmatprep.subr.bf16.mxu0 %v3448_v11 }
 0x1c9   :  { %2993 = vmatprep.subr.bf16.mxu1 %v3449_v12 }
 0x1cb   :  { %2480 = vmatpush1.bf16.msra.mxu0 %v3446_v13 }
 0x1cc   :  { %2994 = vmatpush3.bf16.msra.mxu1 %v3450_v48  ;;  %2481 = vmatprep.subr.bf16.mxu0 %v3453_v15  ;;  %v1128_v48 = vsub.s32 6, %v3688_v46 }
 0x1cd   :  { %2995 = vmatprep.subr.bf16.mxu1 %v3454_v16 }
 0x1ce   :  { %v1129_v15 = vrot.slane %v1100_v59, %v1128_v48 }
 0x1cf   :  { %2482 = vmatpush1.bf16.msra.mxu0 %v3451_v17 }
 0x1d0   :  { %2996 = vmatpush3.bf16.msra.mxu1 %v3455_v19  ;;  %2483 = vmatprep.subr.bf16.mxu0 %v3458_v20 }
 0x1d1   :  { %2997 = vmatprep.subr.bf16.mxu1 %v3459_v21 }
 0x1d3   :  { %2484 = vmatpush1.bf16.msra.mxu0 %v3456_v22 }
 0x1d4   :  { %2998 = vmatpush3.bf16.msra.mxu1 %v3460_v23  ;;  %2494 = vmatprep.subr.bf16.mxu0 %v3463_v24  ;;  %v1120_v24 = vsub.s32 4, %v3688_v46 }
 0x1d6   :  { %2486 = vmatmul.mubr.bf16.vlgmr.msra.gmra.mrb[8].mxu0 %v3705_v1  ;;  %v3478_v1 = vld [vmem:[#allocation7 + $0x4ac] ss:$28 sps:$4 sm:$0xff]  }
 0x1d7   :  { %2608 = vmatmul.mubr.bf16.vlgmr.msra.gmra.mrb[16].mxu1 %v3721_v18  ;;  %2495 = vmatpush1.bf16.msra.mxu0 %v3461_v25  ;;  %v1124_v25 = vsub.s32 5, %v3688_v46 }
 0x1d8   :  { %2526 = vmatprep.mubr.bf16.mxu0 %v3719_v14  ;;  %2496 = vmatprep.subr.bf16.mxu0 %v3466_v26  ;;  %v3479_v14 = vld [vmem:[#allocation7 + $0x4e0] ss:$28 sps:$4 sm:$0xff]   ;;  %v1121_v26 = vrot.slane %v1100_v59, %v1120_v24 }
 0x1db   :  { %2497 = vmatpush1.bf16.msra.mxu0 %v3464_v27  ;;  %v1125_v27 = vrot.slane %v1100_v59, %v1124_v25 }
 0x1dc   :  { %2498 = vmatprep.subr.bf16.mxu0 %v3469_v28 }
 0x1df   :  { %2499 = vmatpush1.bf16.msra.mxu0 %v3467_v29 }
 0x1e0   :  { %2500 = vmatprep.subr.bf16.mxu0 %v3472_v30 }
 0x1e3   :  { %2501 = vmatpush1.bf16.msra.mxu0 %v3470_v31 }
 0x1e4   :  { %2502 = vmatprep.subr.bf16.mxu0 %v3475_v32 }
 0x1e7   :  { %2503 = vmatpush1.bf16.msra.mxu0 %v3473_v61 }
 0x1e8   :  { %2504 = vmatprep.subr.bf16.mxu0 %v3478_v1 }
 0x1eb   :  { %2505 = vmatpush1.bf16.msra.mxu0 %v3476_v33 }
 0x1ec   :  { %2506 = vmatprep.subr.bf16.mxu0 %v3481_v34 }
 0x1ef   :  { %2507 = vmatpush1.bf16.msra.mxu0 %v3479_v14 }
 0x1f0   :  { %2508 = vmatprep.subr.bf16.mxu0 %v3484_v36 }
 0x1f3   :  { %2509 = vmatpush1.bf16.msra.mxu0 %v3482_v37 }
 0x1f4   :  { %2510 = vmatprep.subr.bf16.mxu0 %v3487_v38 }
 0x1f7   :  { %2511 = vmatpush1.bf16.msra.mxu0 %v3485_v39 }
 0x1f8   :  { %2512 = vmatprep.subr.bf16.mxu0 %v3490_v40 }
 0x1fb   :  { %2513 = vmatpush1.bf16.msra.mxu0 %v3488_v41 }
 0x1fc   :  { %2514 = vmatprep.subr.bf16.mxu0 %v3493_v42 }
 0x1ff   :  { %2515 = vmatpush1.bf16.msra.mxu0 %v3491_v43 }
 0x200   :  { %2516 = vmatprep.subr.bf16.mxu0 %v3496_v44 }
 0x203   :  { %2517 = vmatpush1.bf16.msra.mxu0 %v3494_v45 }
 0x204   :  { %2518 = vmatprep.subr.bf16.mxu0 %v3499_v0 }
 0x207   :  { %2519 = vmatpush1.bf16.msra.mxu0 %v3497_v50 }
 0x208   :  { %2520 = vmatprep.subr.bf16.mxu0 %v3502_v51 }
 0x20b   :  { %2521 = vmatpush1.bf16.msra.mxu0 %v3500_v52 }
 0x20c   :  { %2522 = vmatprep.subr.bf16.mxu0 %v3505_v53 }
 0x20f   :  { %2523 = vmatpush1.bf16.msra.mxu0 %v3503_v54 }
 0x210   :  { %2524 = vmatprep.subr.bf16.mxu0 %v3508_v57 }
 0x213   :  { %2525 = vmatpush1.bf16.msra.mxu0 %v3506_v58 }
 0x216   :  { %2527 = vmatmul.mubr.bf16.vlgmr.msra.gmra.mrb[8].mxu0 %v3721_v18 }
 0x269   :  { %v2364_v3 = vpop.f32.mrb[4].mxu0  ;;  %v2446_v4 = vpop.f32.mrb[8].mxu1 }
 0x26a   :  { %v3011_v5 = vadd.f32 %v2364_v3, %v1105_v60  ;;  %v3013_v18 = vadd.f32 %v2446_v4, %v1113_v62  ;;  %v2366_v6 = vpop.f32.mrb[5].mxu0  ;;  %v2448_v7 = vpop.f32.mrb[9].mxu1 }
 0x26b   :  { %v3012_v8 = vadd.f32 %v2366_v6, %v1109_v63  ;;  %v3014_v9 = vadd.f32 %v2448_v7, %v1117_v2  ;;  %v2368_v35 = vpop.f32.mrb[6].mxu0  ;;  %v2450_v10 = vpop.f32.mrb[10].mxu1 }
 0x26c   :  { %2615 = vst [vmem:[#allocation8] sm:$0xff] %v3011_v5  ;;  %2617 = vst [vmem:[#allocation8 + $0x10] sm:$0xff] %v3013_v18  ;;  %v2369_v47 = vpop.f32.mrb[7].mxu0  ;;  %v2451_v55 = vpop.f32.mrb[11].mxu1 }
 0x26d   :  { %2616 = vst [vmem:[#allocation8 + $0x8] sm:$0xff] %v3012_v8  ;;  %2618 = vst [vmem:[#allocation8 + $0x18] sm:$0xff] %v3014_v9 }
 0x28a   :  { %v2977_v49 = vpop.f32.mrb[12].mxu1 }
 0x28b   :  { %v2978_v11 = vpop.f32.mrb[13].mxu1 }
 0x28c   :  { %v2979_v12 = vadd.f32 %v2978_v11, %v2977_v49  ;;  %v2980_v56 = vpop.f32.mrb[14].mxu1 }
 0x28d   :  { %v2981_v13 = vpop.f32.mrb[15].mxu1 }
 0x28e   :  { %v2570_v19 = vadd.f32 %v2979_v12, %v1129_v15 }
 0x2aa   :  { %v2999_v16 = vpop.f32.mrb[16].mxu1 }
 0x2ab   :  { %v3000_v17 = vpop.f32.mrb[17].mxu1 }
 0x2ac   :  { %v3001_v20 = vadd.f32 %v3000_v17, %v2999_v16  ;;  %v3002_v21 = vpop.f32.mrb[18].mxu1 }
 0x2ad   :  { %v3003_v22 = vpop.f32.mrb[19].mxu1 }
 0x2ae   :  { %v2610_v23 = vadd.f32 %v3001_v20, %v2570_v19 }
 0x2b0   :  { %2621 = vst [vmem:[#allocation8 + $0x30] sm:$0xff] %v2610_v23 }
 0x2e9   :  { %v2528_v28 = vpop.f32.mrb[8].mxu0 }
 0x2ea   :  { %v3015_v29 = vadd.f32 %v2528_v28, %v1121_v26  ;;  %v2530_v30 = vpop.f32.mrb[9].mxu0 }
 0x2eb   :  { %v3016_v31 = vadd.f32 %v2530_v30, %v1125_v27  ;;  %v2532_v32 = vpop.f32.mrb[10].mxu0 }
 0x2ec   :  { %2619 = vst [vmem:[#allocation8 + $0x20] sm:$0xff] %v3015_v29  ;;  %v2533_v61 = vpop.f32.mrb[11].mxu0 }
 0x2ed   :  { %2620 = vst [vmem:[#allocation8 + $0x28] sm:$0xff] %v3016_v31 }
 0x2ee   :  { %3586 = shalt.err (!%p3583_p0)
}
 0x2ef   :  { %s3587_s12 = scalar_lea.hbm %s3766_s5, 896 }
 0x2f0   :  { %p3588_p1 = scmp.ne.s32.totalorder %s3766_s5, %s3587_s12  ;;  %p3591_p2 = scmp.lt.u32.totalorder %s3587_s12, %s3766_s5 }
 0x2f2   :  { %p3593_p3 = pnand %p3591_p2, %p3588_p1 }
 0x2f4   :  { %3596 = shalt.err (!%p3593_p3)
}
 0x2f5   :  { %2631 = dma.vmem_to_hbm [thread:$0]  %s2629_s8, 896, %s3766_s5, [#allocation4]  }
 0x2f6   :  { %3601 = dma.done.wait [#allocation4], 896  }
 0x2f7   :  { %3602 = vsyncadd [#allocation4], 4294966400 }
 0x2f8   :  { %2635 = vsyncpa [#allocation3], 1 }
 0x2f9   :  { %2636 = vsyncpa [#allocation6], 1 }
 0x2fa   :  { %2637 = vsyncpa [#allocation4], 1 }

</bundles_post_ra>
